<compile_context>
chip_gen: v7x
topology: tpu7x:2x2x1
jax: 0.10.0
libtpu: 0.0.40
codegen_flags: <defaults>
</compile_context>

<pallas_src>
import math

import jax
import jax.numpy as jnp
from jax.experimental import pallas as pl
from jax.experimental.pallas import tpu as pltpu  # noqa: F401  (TPU backend assumed)

# ---------------- config (small, deterministic) ----------------
BATCH = 2
SEQ = 8
HIDDEN = 32
NUM_HEADS = 4
HEAD_DIM = HIDDEN // NUM_HEADS
INTERMEDIATE = 64
NUM_LAYERS = 2
NUM_CLASSES = 3
VOCAB = 100
MAX_POS = 64
LN_EPS = 1e-12


# ---------------- in-kernel helpers ----------------
def _layer_norm(x, gamma, beta, eps=LN_EPS):
    mu = jnp.mean(x, axis=-1, keepdims=True)
    var = jnp.mean((x - mu) ** 2, axis=-1, keepdims=True)
    return (x - mu) * jax.lax.rsqrt(var + eps) * gamma + beta


def _dot_bf16(a, b):
    """MXU matmul: bf16 operands, f32 accumulation."""
    return jnp.dot(a.astype(jnp.bfloat16), b.astype(jnp.bfloat16),
                   preferred_element_type=jnp.float32)


# ---------------- single fused kernel ----------------
def model_kernel(
    emb_ref, amask_ref,
    emb_g_ref, emb_b_ref,
    wqkv_ref, bqkv_ref, wo_ref, bo_ref,
    ln1_g_ref, ln1_b_ref,
    w1_ref, b1_ref, w2_ref, b2_ref,
    ln2_g_ref, ln2_b_ref,
    wp_ref, bp_ref, wc_ref, bc_ref,
    hidden_ref, logits_ref,
):
    B, _, S = amask_ref.shape          # additive mask carries (B, 1, S)
    H = emb_ref.shape[-1]              # embeddings arrive flattened: (B*S, H)
    scale = 1.0 / math.sqrt(HEAD_DIM)

    # Embedding LayerNorm (HF embedding dropout is identity at eval).  (B*S, H)
    x = _layer_norm(emb_ref[...], emb_g_ref[...], emb_b_ref[...])

    # BERT additive mask: 0 for attended keys, -10000 for padded keys.  (B, 1, S)
    add_mask = (1.0 - amask_ref[...]) * -10000.0

    for l in range(NUM_LAYERS):  # static unroll over layers — weights stay resident in VMEM
        # ---- fused QKV projection: one (B*S, H) @ (H, 3H) matmul ----
        qkv = _dot_bf16(x, wqkv_ref[l]) + bqkv_ref[l]          # (B*S, 3H) f32
        q = qkv[:, 0 * H:1 * H].reshape(B, S, H)
        k = qkv[:, 1 * H:2 * H].reshape(B, S, H)
        v = qkv[:, 2 * H:3 * H].reshape(B, S, H)

        # ---- multi-head self-attention, batched over the full batch per head ----
        head_outs = []
        for h in range(NUM_HEADS):  # static unroll (tiny head dims)
            lo, hi = h * HEAD_DIM, (h + 1) * HEAD_DIM
            qh = q[:, :, lo:hi].astype(jnp.bfloat16)
            kh = k[:, :, lo:hi].astype(jnp.bfloat16)
            vh = v[:, :, lo:hi].astype(jnp.bfloat16)
            s = jnp.einsum('bqd,bkd->bqk', qh, kh,
                           preferred_element_type=jnp.float32) * scale   # (B, S, S)
            s = s + add_mask                                             # mask padded keys
            s = s - jnp.max(s, axis=-1, keepdims=True)
            p = jnp.exp(s)
            p = p * pl.reciprocal(jnp.sum(p, axis=-1, keepdims=True), approx=True)
            head_outs.append(
                jnp.einsum('bqk,bkd->bqd', p.astype(jnp.bfloat16), vh,
                           preferred_element_type=jnp.float32))
        ctx = jnp.concatenate(head_outs, axis=-1).reshape(B * S, H)      # (B*S, H)

        attn_out = _dot_bf16(ctx, wo_ref[l]) + bo_ref[l]
        x = _layer_norm(x + attn_out, ln1_g_ref[l], ln1_b_ref[l])

        # ---- feed-forward ----
        ff = _dot_bf16(x, w1_ref[l]) + b1_ref[l]
        # TODO(synk): HF BERT default is exact (erf) GELU; tanh approximation kept for robust TPU lowering.
        ff = jax.nn.gelu(ff, approximate=True)
        ff = _dot_bf16(ff, w2_ref[l]) + b2_ref[l]
        x = _layer_norm(x + ff, ln2_g_ref[l], ln2_b_ref[l])

    # last_hidden_states written as a flat (B*S, H) slab (plain 2D store); wrapper reshapes.
    hidden_ref[...] = x

    # Pooler (tanh linear on [CLS]) + dropout (identity at eval) + classifier linear.
    cls = jnp.concatenate([x[b * S:b * S + 1, :] for b in range(B)], axis=0)  # (B, H)
    pooled = jnp.tanh(_dot_bf16(cls, wp_ref[...]) + bp_ref[...])
    logits_ref[...] = _dot_bf16(pooled, wc_ref[...]) + bc_ref[...]


# ---------------- wrapper ----------------
def tweet_sentiment_forward(params, input_ids, attention_mask):
    B, S = input_ids.shape
    H = HIDDEN

    # Embedding-table gather stays in XLA (data-dependent gather); LN runs inside the kernel.
    emb = (params["word_emb"][input_ids]
           + params["pos_emb"][:S][None, :, :]
           + params["type_emb"][0][None, None, :]).astype(jnp.float32)
    emb_flat = emb.reshape(B * S, H)                              # flatten outside the kernel
    amask = attention_mask.astype(jnp.float32).reshape(B, 1, S)

    hidden_flat, logits = pl.pallas_call(
        model_kernel,
        out_shape=(jax.ShapeDtypeStruct((B * S, H), jnp.float32),
                   jax.ShapeDtypeStruct((B, NUM_CLASSES), jnp.float32)),
    )(emb_flat, amask,
      params["emb_ln_g"], params["emb_ln_b"],
      params["wqkv"], params["bqkv"], params["wo"], params["bo"],
      params["ln1_g"], params["ln1_b"],
      params["w1"], params["b1"], params["w2"], params["b2"],
      params["ln2_g"], params["ln2_b"],
      params["pooler_w"], params["pooler_b"],
      params["classifier_w"], params["classifier_b"])
    return hidden_flat.reshape(B, S, H), logits


# ---------------- parameter init (deterministic) ----------------
def init_params(key):
    def nrm(k, shape, scale=0.02, dtype=jnp.bfloat16):
        return (scale * jax.random.normal(k, shape, dtype=jnp.float32)).astype(dtype)

    keys = iter(jax.random.split(key, 32))
    L, H, I = NUM_LAYERS, HIDDEN, INTERMEDIATE
    params = {
        "word_emb": nrm(next(keys), (VOCAB, H), dtype=jnp.float32),
        "pos_emb": nrm(next(keys), (MAX_POS, H), dtype=jnp.float32),
        "type_emb": nrm(next(keys), (2, H), dtype=jnp.float32),
        "emb_ln_g": jnp.ones((1, H), jnp.float32),
        "emb_ln_b": jnp.zeros((1, H), jnp.float32),
        # Per-layer weights stacked along a leading layer axis.
        # Matmul weights in bf16 (MXU-native, half the DMA bytes); biases / LN params f32.
        "wqkv": nrm(next(keys), (L, H, 3 * H)),
        "bqkv": jnp.zeros((L, 1, 3 * H), jnp.float32),
        "wo": nrm(next(keys), (L, H, H)),
        "bo": jnp.zeros((L, 1, H), jnp.float32),
        "ln1_g": jnp.ones((L, 1, H), jnp.float32),
        "ln1_b": jnp.zeros((L, 1, H), jnp.float32),
        "w1": nrm(next(keys), (L, H, I)),
        "b1": jnp.zeros((L, 1, I), jnp.float32),
        "w2": nrm(next(keys), (L, I, H)),
        "b2": jnp.zeros((L, 1, H), jnp.float32),
        "ln2_g": jnp.ones((L, 1, H), jnp.float32),
        "ln2_b": jnp.zeros((L, 1, H), jnp.float32),
        "pooler_w": nrm(next(keys), (H, H)),
        "pooler_b": jnp.zeros((1, H), jnp.float32),
        "classifier_w": nrm(next(keys), (H, NUM_CLASSES)),
        "classifier_b": jnp.zeros((1, NUM_CLASSES), jnp.float32),
    }
    return params


if __name__ == "__main__":
    key = jax.random.PRNGKey(0)
    kp, kid = jax.random.split(key)
    params = init_params(kp)

    input_ids = jax.random.randint(kid, (BATCH, SEQ), 0, VOCAB, dtype=jnp.int32)
    attention_mask = jnp.ones((BATCH, SEQ), jnp.int32).at[:, SEQ - 2:].set(0)  # last 2 tokens padded

    fwd = jax.jit(tweet_sentiment_forward)
    last_hidden, logits = fwd(params, input_ids, attention_mask)
    jax.block_until_ready((last_hidden, logits))

    assert last_hidden.shape == (BATCH, SEQ, HIDDEN)
    assert logits.shape == (BATCH, NUM_CLASSES)
    assert bool(jnp.all(jnp.isfinite(last_hidden))) and bool(jnp.all(jnp.isfinite(logits)))
    print("KERNEL_OK")
</pallas_src>

<mosaic_0001>
module attributes {stable_mosaic.version = 11 : i64} {
  func.func @model_kernel(%arg0: memref<16x32xf32, #tpu.memory_space<vmem>>, %arg1: memref<2x1x8xf32, #tpu.memory_space<vmem>>, %arg2: memref<1x32xf32, #tpu.memory_space<vmem>>, %arg3: memref<1x32xf32, #tpu.memory_space<vmem>>, %arg4: memref<2x32x96xbf16, #tpu.memory_space<vmem>>, %arg5: memref<2x1x96xf32, #tpu.memory_space<vmem>>, %arg6: memref<2x32x32xbf16, #tpu.memory_space<vmem>>, %arg7: memref<2x1x32xf32, #tpu.memory_space<vmem>>, %arg8: memref<2x1x32xf32, #tpu.memory_space<vmem>>, %arg9: memref<2x1x32xf32, #tpu.memory_space<vmem>>, %arg10: memref<2x32x64xbf16, #tpu.memory_space<vmem>>, %arg11: memref<2x1x64xf32, #tpu.memory_space<vmem>>, %arg12: memref<2x64x32xbf16, #tpu.memory_space<vmem>>, %arg13: memref<2x1x32xf32, #tpu.memory_space<vmem>>, %arg14: memref<2x1x32xf32, #tpu.memory_space<vmem>>, %arg15: memref<2x1x32xf32, #tpu.memory_space<vmem>>, %arg16: memref<32x32xbf16, #tpu.memory_space<vmem>>, %arg17: memref<1x32xf32, #tpu.memory_space<vmem>>, %arg18: memref<32x3xbf16, #tpu.memory_space<vmem>>, %arg19: memref<1x3xf32, #tpu.memory_space<vmem>>, %arg20: memref<16x32xf32, #tpu.memory_space<vmem>>, %arg21: memref<2x3xf32, #tpu.memory_space<vmem>>) attributes {dimension_semantics = [], scalar_prefetch = 0 : i64, scratch_operands = 0 : i64, tpu.core_type = #tpu.core_type<tc>} {
    %c0 = arith.constant 0 : index
    %c0_0 = arith.constant 0 : index
    %0 = vector.load %arg0[%c0, %c0_0] : memref<16x32xf32, #tpu.memory_space<vmem>>, vector<16x32xf32>
    %c0_1 = arith.constant 0 : index
    %c0_2 = arith.constant 0 : index
    %1 = vector.load %arg2[%c0_1, %c0_2] : memref<1x32xf32, #tpu.memory_space<vmem>>, vector<1x32xf32>
    %c0_3 = arith.constant 0 : index
    %c0_4 = arith.constant 0 : index
    %2 = vector.load %arg3[%c0_3, %c0_4] : memref<1x32xf32, #tpu.memory_space<vmem>>, vector<1x32xf32>
    %cst = arith.constant dense<0.000000e+00> : vector<16xf32>
    %3 = vector.multi_reduction <add>, %0, %cst [1] : vector<16x32xf32> to vector<16xf32>
    %4 = vector.shape_cast %3 : vector<16xf32> to vector<16x1xf32>
    %cst_5 = arith.constant 3.200000e+01 : f32
    %5 = vector.broadcast %cst_5 : f32 to vector<16x1xf32>
    %6 = arith.divf %4, %5 : vector<16x1xf32>
    %7 = vector.broadcast %6 : vector<16x1xf32> to vector<16x32xf32>
    %8 = arith.subf %0, %7 : vector<16x32xf32>
    %9 = arith.mulf %8, %8 : vector<16x32xf32>
    %cst_6 = arith.constant dense<0.000000e+00> : vector<16xf32>
    %10 = vector.multi_reduction <add>, %9, %cst_6 [1] : vector<16x32xf32> to vector<16xf32>
    %11 = vector.shape_cast %10 : vector<16xf32> to vector<16x1xf32>
    %cst_7 = arith.constant 3.200000e+01 : f32
    %12 = vector.broadcast %cst_7 : f32 to vector<16x1xf32>
    %13 = arith.divf %11, %12 : vector<16x1xf32>
    %14 = vector.broadcast %6 : vector<16x1xf32> to vector<16x32xf32>
    %15 = arith.subf %0, %14 : vector<16x32xf32>
    %cst_8 = arith.constant 9.99999996E-13 : f32
    %16 = vector.broadcast %cst_8 : f32 to vector<16x1xf32>
    %17 = arith.addf %13, %16 : vector<16x1xf32>
    %18 = math.rsqrt %17 : vector<16x1xf32>
    %19 = vector.broadcast %18 : vector<16x1xf32> to vector<16x32xf32>
    %20 = arith.mulf %15, %19 : vector<16x32xf32>
    %21 = vector.broadcast %1 : vector<1x32xf32> to vector<16x32xf32>
    %22 = arith.mulf %20, %21 : vector<16x32xf32>
    %23 = vector.broadcast %2 : vector<1x32xf32> to vector<16x32xf32>
    %24 = arith.addf %22, %23 : vector<16x32xf32>
    %c0_9 = arith.constant 0 : index
    %c0_10 = arith.constant 0 : index
    %c0_11 = arith.constant 0 : index
    %25 = vector.load %arg1[%c0_9, %c0_10, %c0_11] : memref<2x1x8xf32, #tpu.memory_space<vmem>>, vector<2x1x8xf32>
    %cst_12 = arith.constant 1.000000e+00 : f32
    %26 = vector.broadcast %cst_12 : f32 to vector<2x1x8xf32>
    %27 = arith.subf %26, %25 : vector<2x1x8xf32>
    %cst_13 = arith.constant -1.000000e+04 : f32
    %28 = vector.broadcast %cst_13 : f32 to vector<2x1x8xf32>
    %29 = arith.mulf %27, %28 : vector<2x1x8xf32>
    %c0_14 = arith.constant 0 : index
    %c0_15 = arith.constant 0 : index
    %c0_16 = arith.constant 0 : index
    %30 = vector.load %arg4[%c0_14, %c0_15, %c0_16] : memref<2x32x96xbf16, #tpu.memory_space<vmem>>, vector<1x32x96xbf16>
    %31 = vector.shape_cast %30 : vector<1x32x96xbf16> to vector<32x96xbf16>
    %32 = arith.truncf %24 : vector<16x32xf32> to vector<16x32xbf16>
    %cst_17 = arith.constant dense<0.000000e+00> : vector<16x96xf32>
    %33 = tpu.matmul %32, %31, %cst_17 {dimension_numbers = #tpu.dot_dimension_numbers<[1], [0], [0], [1], [0, 0, 1, 1], [], []>} : vector<16x32xbf16>, vector<32x96xbf16>, vector<16x96xf32> -> vector<16x96xf32>
    %c0_18 = arith.constant 0 : index
    %c0_19 = arith.constant 0 : index
    %c0_20 = arith.constant 0 : index
    %34 = vector.load %arg5[%c0_18, %c0_19, %c0_20] : memref<2x1x96xf32, #tpu.memory_space<vmem>>, vector<1x1x96xf32>
    %35 = vector.shape_cast %34 : vector<1x1x96xf32> to vector<1x96xf32>
    %36 = vector.broadcast %35 : vector<1x96xf32> to vector<16x96xf32>
    %37 = arith.addf %33, %36 : vector<16x96xf32>
    %38 = vector.extract_strided_slice %37 {offsets = [0, 0], sizes = [16, 32], strides = [1, 1]} : vector<16x96xf32> to vector<16x32xf32>
    %39 = vector.shape_cast %38 : vector<16x32xf32> to vector<2x8x32xf32>
    %40 = vector.extract_strided_slice %37 {offsets = [0, 32], sizes = [16, 32], strides = [1, 1]} : vector<16x96xf32> to vector<16x32xf32>
    %41 = vector.shape_cast %40 : vector<16x32xf32> to vector<2x8x32xf32>
    %42 = vector.extract_strided_slice %37 {offsets = [0, 64], sizes = [16, 32], strides = [1, 1]} : vector<16x96xf32> to vector<16x32xf32>
    %43 = vector.shape_cast %42 : vector<16x32xf32> to vector<2x8x32xf32>
    %44 = vector.extract_strided_slice %39 {offsets = [0, 0, 0], sizes = [2, 8, 8], strides = [1, 1, 1]} : vector<2x8x32xf32> to vector<2x8x8xf32>
    %45 = arith.truncf %44 : vector<2x8x8xf32> to vector<2x8x8xbf16>
    %46 = vector.extract_strided_slice %41 {offsets = [0, 0, 0], sizes = [2, 8, 8], strides = [1, 1, 1]} : vector<2x8x32xf32> to vector<2x8x8xf32>
    %47 = arith.truncf %46 : vector<2x8x8xf32> to vector<2x8x8xbf16>
    %48 = vector.extract_strided_slice %43 {offsets = [0, 0, 0], sizes = [2, 8, 8], strides = [1, 1, 1]} : vector<2x8x32xf32> to vector<2x8x8xf32>
    %49 = arith.truncf %48 : vector<2x8x8xf32> to vector<2x8x8xbf16>
    "tpu.trace_start"() <{level = 10 : i32, message = "bqd,bkd->bqk"}> : () -> ()
    %cst_21 = arith.constant dense<0.000000e+00> : vector<2x8x8xf32>
    %50 = tpu.matmul %45, %47, %cst_21 {dimension_numbers = #tpu.dot_dimension_numbers<[2], [2], [1], [1], [0, 0, 0, 1, 1, 1], [0], [0]>} : vector<2x8x8xbf16>, vector<2x8x8xbf16>, vector<2x8x8xf32> -> vector<2x8x8xf32>
    "tpu.trace_stop"() : () -> ()
    %cst_22 = arith.constant 0.353553385 : f32
    %51 = vector.broadcast %cst_22 : f32 to vector<2x8x8xf32>
    %52 = arith.mulf %50, %51 : vector<2x8x8xf32>
    %53 = vector.broadcast %29 : vector<2x1x8xf32> to vector<2x8x8xf32>
    %54 = arith.addf %52, %53 : vector<2x8x8xf32>
    %cst_23 = arith.constant dense<0xFF800000> : vector<2x8xf32>
    %55 = vector.multi_reduction <maximumf>, %54, %cst_23 [2] : vector<2x8x8xf32> to vector<2x8xf32>
    %56 = vector.shape_cast %55 : vector<2x8xf32> to vector<2x8x1xf32>
    %57 = vector.broadcast %56 : vector<2x8x1xf32> to vector<2x8x8xf32>
    %58 = arith.subf %54, %57 : vector<2x8x8xf32>
    %59 = math.exp %58 : vector<2x8x8xf32>
    %cst_24 = arith.constant dense<0.000000e+00> : vector<2x8xf32>
    %60 = vector.multi_reduction <add>, %59, %cst_24 [2] : vector<2x8x8xf32> to vector<2x8xf32>
    %61 = vector.shape_cast %60 : vector<2x8xf32> to vector<2x8x1xf32>
    %62 = tpu.reciprocal %61 {approx = true} : vector<2x8x1xf32> -> vector<2x8x1xf32>
    %63 = vector.broadcast %62 : vector<2x8x1xf32> to vector<2x8x8xf32>
    %64 = arith.mulf %59, %63 : vector<2x8x8xf32>
    %65 = arith.truncf %64 : vector<2x8x8xf32> to vector<2x8x8xbf16>
    "tpu.trace_start"() <{level = 10 : i32, message = "bqk,bkd->bqd"}> : () -> ()
    %cst_25 = arith.constant dense<0.000000e+00> : vector<2x8x8xf32>
    %66 = tpu.matmul %65, %49, %cst_25 {dimension_numbers = #tpu.dot_dimension_numbers<[2], [1], [1], [2], [0, 0, 0, 1, 1, 2], [0], [0]>} : vector<2x8x8xbf16>, vector<2x8x8xbf16>, vector<2x8x8xf32> -> vector<2x8x8xf32>
    "tpu.trace_stop"() : () -> ()
    %67 = vector.extract_strided_slice %39 {offsets = [0, 0, 8], sizes = [2, 8, 8], strides = [1, 1, 1]} : vector<2x8x32xf32> to vector<2x8x8xf32>
    %68 = arith.truncf %67 : vector<2x8x8xf32> to vector<2x8x8xbf16>
    %69 = vector.extract_strided_slice %41 {offsets = [0, 0, 8], sizes = [2, 8, 8], strides = [1, 1, 1]} : vector<2x8x32xf32> to vector<2x8x8xf32>
    %70 = arith.truncf %69 : vector<2x8x8xf32> to vector<2x8x8xbf16>
    %71 = vector.extract_strided_slice %43 {offsets = [0, 0, 8], sizes = [2, 8, 8], strides = [1, 1, 1]} : vector<2x8x32xf32> to vector<2x8x8xf32>
    %72 = arith.truncf %71 : vector<2x8x8xf32> to vector<2x8x8xbf16>
    "tpu.trace_start"() <{level = 10 : i32, message = "bqd,bkd->bqk"}> : () -> ()
    %cst_26 = arith.constant dense<0.000000e+00> : vector<2x8x8xf32>
    %73 = tpu.matmul %68, %70, %cst_26 {dimension_numbers = #tpu.dot_dimension_numbers<[2], [2], [1], [1], [0, 0, 0, 1, 1, 1], [0], [0]>} : vector<2x8x8xbf16>, vector<2x8x8xbf16>, vector<2x8x8xf32> -> vector<2x8x8xf32>
    "tpu.trace_stop"() : () -> ()
    %cst_27 = arith.constant 0.353553385 : f32
    %74 = vector.broadcast %cst_27 : f32 to vector<2x8x8xf32>
    %75 = arith.mulf %73, %74 : vector<2x8x8xf32>
    %76 = vector.broadcast %29 : vector<2x1x8xf32> to vector<2x8x8xf32>
    %77 = arith.addf %75, %76 : vector<2x8x8xf32>
    %cst_28 = arith.constant dense<0xFF800000> : vector<2x8xf32>
    %78 = vector.multi_reduction <maximumf>, %77, %cst_28 [2] : vector<2x8x8xf32> to vector<2x8xf32>
    %79 = vector.shape_cast %78 : vector<2x8xf32> to vector<2x8x1xf32>
    %80 = vector.broadcast %79 : vector<2x8x1xf32> to vector<2x8x8xf32>
    %81 = arith.subf %77, %80 : vector<2x8x8xf32>
    %82 = math.exp %81 : vector<2x8x8xf32>
    %cst_29 = arith.constant dense<0.000000e+00> : vector<2x8xf32>
    %83 = vector.multi_reduction <add>, %82, %cst_29 [2] : vector<2x8x8xf32> to vector<2x8xf32>
    %84 = vector.shape_cast %83 : vector<2x8xf32> to vector<2x8x1xf32>
    %85 = tpu.reciprocal %84 {approx = true} : vector<2x8x1xf32> -> vector<2x8x1xf32>
    %86 = vector.broadcast %85 : vector<2x8x1xf32> to vector<2x8x8xf32>
    %87 = arith.mulf %82, %86 : vector<2x8x8xf32>
    %88 = arith.truncf %87 : vector<2x8x8xf32> to vector<2x8x8xbf16>
    "tpu.trace_start"() <{level = 10 : i32, message = "bqk,bkd->bqd"}> : () -> ()
    %cst_30 = arith.constant dense<0.000000e+00> : vector<2x8x8xf32>
    %89 = tpu.matmul %88, %72, %cst_30 {dimension_numbers = #tpu.dot_dimension_numbers<[2], [1], [1], [2], [0, 0, 0, 1, 1, 2], [0], [0]>} : vector<2x8x8xbf16>, vector<2x8x8xbf16>, vector<2x8x8xf32> -> vector<2x8x8xf32>
    "tpu.trace_stop"() : () -> ()
    %90 = vector.extract_strided_slice %39 {offsets = [0, 0, 16], sizes = [2, 8, 8], strides = [1, 1, 1]} : vector<2x8x32xf32> to vector<2x8x8xf32>
    %91 = arith.truncf %90 : vector<2x8x8xf32> to vector<2x8x8xbf16>
    %92 = vector.extract_strided_slice %41 {offsets = [0, 0, 16], sizes = [2, 8, 8], strides = [1, 1, 1]} : vector<2x8x32xf32> to vector<2x8x8xf32>
    %93 = arith.truncf %92 : vector<2x8x8xf32> to vector<2x8x8xbf16>
    %94 = vector.extract_strided_slice %43 {offsets = [0, 0, 16], sizes = [2, 8, 8], strides = [1, 1, 1]} : vector<2x8x32xf32> to vector<2x8x8xf32>
    %95 = arith.truncf %94 : vector<2x8x8xf32> to vector<2x8x8xbf16>
    "tpu.trace_start"() <{level = 10 : i32, message = "bqd,bkd->bqk"}> : () -> ()
    %cst_31 = arith.constant dense<0.000000e+00> : vector<2x8x8xf32>
    %96 = tpu.matmul %91, %93, %cst_31 {dimension_numbers = #tpu.dot_dimension_numbers<[2], [2], [1], [1], [0, 0, 0, 1, 1, 1], [0], [0]>} : vector<2x8x8xbf16>, vector<2x8x8xbf16>, vector<2x8x8xf32> -> vector<2x8x8xf32>
    "tpu.trace_stop"() : () -> ()
    %cst_32 = arith.constant 0.353553385 : f32
    %97 = vector.broadcast %cst_32 : f32 to vector<2x8x8xf32>
    %98 = arith.mulf %96, %97 : vector<2x8x8xf32>
    %99 = vector.broadcast %29 : vector<2x1x8xf32> to vector<2x8x8xf32>
    %100 = arith.addf %98, %99 : vector<2x8x8xf32>
    %cst_33 = arith.constant dense<0xFF800000> : vector<2x8xf32>
    %101 = vector.multi_reduction <maximumf>, %100, %cst_33 [2] : vector<2x8x8xf32> to vector<2x8xf32>
    %102 = vector.shape_cast %101 : vector<2x8xf32> to vector<2x8x1xf32>
    %103 = vector.broadcast %102 : vector<2x8x1xf32> to vector<2x8x8xf32>
    %104 = arith.subf %100, %103 : vector<2x8x8xf32>
    %105 = math.exp %104 : vector<2x8x8xf32>
    %cst_34 = arith.constant dense<0.000000e+00> : vector<2x8xf32>
    %106 = vector.multi_reduction <add>, %105, %cst_34 [2] : vector<2x8x8xf32> to vector<2x8xf32>
    %107 = vector.shape_cast %106 : vector<2x8xf32> to vector<2x8x1xf32>
    %108 = tpu.reciprocal %107 {approx = true} : vector<2x8x1xf32> -> vector<2x8x1xf32>
    %109 = vector.broadcast %108 : vector<2x8x1xf32> to vector<2x8x8xf32>
    %110 = arith.mulf %105, %109 : vector<2x8x8xf32>
    %111 = arith.truncf %110 : vector<2x8x8xf32> to vector<2x8x8xbf16>
    "tpu.trace_start"() <{level = 10 : i32, message = "bqk,bkd->bqd"}> : () -> ()
    %cst_35 = arith.constant dense<0.000000e+00> : vector<2x8x8xf32>
    %112 = tpu.matmul %111, %95, %cst_35 {dimension_numbers = #tpu.dot_dimension_numbers<[2], [1], [1], [2], [0, 0, 0, 1, 1, 2], [0], [0]>} : vector<2x8x8xbf16>, vector<2x8x8xbf16>, vector<2x8x8xf32> -> vector<2x8x8xf32>
    "tpu.trace_stop"() : () -> ()
    %113 = vector.extract_strided_slice %39 {offsets = [0, 0, 24], sizes = [2, 8, 8], strides = [1, 1, 1]} : vector<2x8x32xf32> to vector<2x8x8xf32>
    %114 = arith.truncf %113 : vector<2x8x8xf32> to vector<2x8x8xbf16>
    %115 = vector.extract_strided_slice %41 {offsets = [0, 0, 24], sizes = [2, 8, 8], strides = [1, 1, 1]} : vector<2x8x32xf32> to vector<2x8x8xf32>
    %116 = arith.truncf %115 : vector<2x8x8xf32> to vector<2x8x8xbf16>
    %117 = vector.extract_strided_slice %43 {offsets = [0, 0, 24], sizes = [2, 8, 8], strides = [1, 1, 1]} : vector<2x8x32xf32> to vector<2x8x8xf32>
    %118 = arith.truncf %117 : vector<2x8x8xf32> to vector<2x8x8xbf16>
    "tpu.trace_start"() <{level = 10 : i32, message = "bqd,bkd->bqk"}> : () -> ()
    %cst_36 = arith.constant dense<0.000000e+00> : vector<2x8x8xf32>
    %119 = tpu.matmul %114, %116, %cst_36 {dimension_numbers = #tpu.dot_dimension_numbers<[2], [2], [1], [1], [0, 0, 0, 1, 1, 1], [0], [0]>} : vector<2x8x8xbf16>, vector<2x8x8xbf16>, vector<2x8x8xf32> -> vector<2x8x8xf32>
    "tpu.trace_stop"() : () -> ()
    %cst_37 = arith.constant 0.353553385 : f32
    %120 = vector.broadcast %cst_37 : f32 to vector<2x8x8xf32>
    %121 = arith.mulf %119, %120 : vector<2x8x8xf32>
    %122 = vector.broadcast %29 : vector<2x1x8xf32> to vector<2x8x8xf32>
    %123 = arith.addf %121, %122 : vector<2x8x8xf32>
    %cst_38 = arith.constant dense<0xFF800000> : vector<2x8xf32>
    %124 = vector.multi_reduction <maximumf>, %123, %cst_38 [2] : vector<2x8x8xf32> to vector<2x8xf32>
    %125 = vector.shape_cast %124 : vector<2x8xf32> to vector<2x8x1xf32>
    %126 = vector.broadcast %125 : vector<2x8x1xf32> to vector<2x8x8xf32>
    %127 = arith.subf %123, %126 : vector<2x8x8xf32>
    %128 = math.exp %127 : vector<2x8x8xf32>
    %cst_39 = arith.constant dense<0.000000e+00> : vector<2x8xf32>
    %129 = vector.multi_reduction <add>, %128, %cst_39 [2] : vector<2x8x8xf32> to vector<2x8xf32>
    %130 = vector.shape_cast %129 : vector<2x8xf32> to vector<2x8x1xf32>
    %131 = tpu.reciprocal %130 {approx = true} : vector<2x8x1xf32> -> vector<2x8x1xf32>
    %132 = vector.broadcast %131 : vector<2x8x1xf32> to vector<2x8x8xf32>
    %133 = arith.mulf %128, %132 : vector<2x8x8xf32>
    %134 = arith.truncf %133 : vector<2x8x8xf32> to vector<2x8x8xbf16>
    "tpu.trace_start"() <{level = 10 : i32, message = "bqk,bkd->bqd"}> : () -> ()
    %cst_40 = arith.constant dense<0.000000e+00> : vector<2x8x8xf32>
    %135 = tpu.matmul %134, %118, %cst_40 {dimension_numbers = #tpu.dot_dimension_numbers<[2], [1], [1], [2], [0, 0, 0, 1, 1, 2], [0], [0]>} : vector<2x8x8xbf16>, vector<2x8x8xbf16>, vector<2x8x8xf32> -> vector<2x8x8xf32>
    "tpu.trace_stop"() : () -> ()
    %136 = tpu.concatenate %66, %89, %112, %135 in 2 : vector<2x8x8xf32>, vector<2x8x8xf32>, vector<2x8x8xf32>, vector<2x8x8xf32> -> vector<2x8x32xf32>
    %137 = vector.shape_cast %136 : vector<2x8x32xf32> to vector<16x32xf32>
    %c0_41 = arith.constant 0 : index
    %c0_42 = arith.constant 0 : index
    %c0_43 = arith.constant 0 : index
    %138 = vector.load %arg6[%c0_41, %c0_42, %c0_43] : memref<2x32x32xbf16, #tpu.memory_space<vmem>>, vector<1x32x32xbf16>
    %139 = vector.shape_cast %138 : vector<1x32x32xbf16> to vector<32x32xbf16>
    %140 = arith.truncf %137 : vector<16x32xf32> to vector<16x32xbf16>
    %cst_44 = arith.constant dense<0.000000e+00> : vector<16x32xf32>
    %141 = tpu.matmul %140, %139, %cst_44 {dimension_numbers = #tpu.dot_dimension_numbers<[1], [0], [0], [1], [0, 0, 1, 1], [], []>} : vector<16x32xbf16>, vector<32x32xbf16>, vector<16x32xf32> -> vector<16x32xf32>
    %c0_45 = arith.constant 0 : index
    %c0_46 = arith.constant 0 : index
    %c0_47 = arith.constant 0 : index
    %142 = vector.load %arg7[%c0_45, %c0_46, %c0_47] : memref<2x1x32xf32, #tpu.memory_space<vmem>>, vector<1x1x32xf32>
    %143 = vector.shape_cast %142 : vector<1x1x32xf32> to vector<1x32xf32>
    %144 = vector.broadcast %143 : vector<1x32xf32> to vector<16x32xf32>
    %145 = arith.addf %141, %144 : vector<16x32xf32>
    %146 = arith.addf %24, %145 : vector<16x32xf32>
    %c0_48 = arith.constant 0 : index
    %c0_49 = arith.constant 0 : index
    %c0_50 = arith.constant 0 : index
    %147 = vector.load %arg8[%c0_48, %c0_49, %c0_50] : memref<2x1x32xf32, #tpu.memory_space<vmem>>, vector<1x1x32xf32>
    %148 = vector.shape_cast %147 : vector<1x1x32xf32> to vector<1x32xf32>
    %c0_51 = arith.constant 0 : index
    %c0_52 = arith.constant 0 : index
    %c0_53 = arith.constant 0 : index
    %149 = vector.load %arg9[%c0_51, %c0_52, %c0_53] : memref<2x1x32xf32, #tpu.memory_space<vmem>>, vector<1x1x32xf32>
    %150 = vector.shape_cast %149 : vector<1x1x32xf32> to vector<1x32xf32>
    %cst_54 = arith.constant dense<0.000000e+00> : vector<16xf32>
    %151 = vector.multi_reduction <add>, %146, %cst_54 [1] : vector<16x32xf32> to vector<16xf32>
    %152 = vector.shape_cast %151 : vector<16xf32> to vector<16x1xf32>
    %cst_55 = arith.constant 3.200000e+01 : f32
    %153 = vector.broadcast %cst_55 : f32 to vector<16x1xf32>
    %154 = arith.divf %152, %153 : vector<16x1xf32>
    %155 = vector.broadcast %154 : vector<16x1xf32> to vector<16x32xf32>
    %156 = arith.subf %146, %155 : vector<16x32xf32>
    %157 = arith.mulf %156, %156 : vector<16x32xf32>
    %cst_56 = arith.constant dense<0.000000e+00> : vector<16xf32>
    %158 = vector.multi_reduction <add>, %157, %cst_56 [1] : vector<16x32xf32> to vector<16xf32>
    %159 = vector.shape_cast %158 : vector<16xf32> to vector<16x1xf32>
    %cst_57 = arith.constant 3.200000e+01 : f32
    %160 = vector.broadcast %cst_57 : f32 to vector<16x1xf32>
    %161 = arith.divf %159, %160 : vector<16x1xf32>
    %162 = vector.broadcast %154 : vector<16x1xf32> to vector<16x32xf32>
    %163 = arith.subf %146, %162 : vector<16x32xf32>
    %cst_58 = arith.constant 9.99999996E-13 : f32
    %164 = vector.broadcast %cst_58 : f32 to vector<16x1xf32>
    %165 = arith.addf %161, %164 : vector<16x1xf32>
    %166 = math.rsqrt %165 : vector<16x1xf32>
    %167 = vector.broadcast %166 : vector<16x1xf32> to vector<16x32xf32>
    %168 = arith.mulf %163, %167 : vector<16x32xf32>
    %169 = vector.broadcast %148 : vector<1x32xf32> to vector<16x32xf32>
    %170 = arith.mulf %168, %169 : vector<16x32xf32>
    %171 = vector.broadcast %150 : vector<1x32xf32> to vector<16x32xf32>
    %172 = arith.addf %170, %171 : vector<16x32xf32>
    %c0_59 = arith.constant 0 : index
    %c0_60 = arith.constant 0 : index
    %c0_61 = arith.constant 0 : index
    %173 = vector.load %arg10[%c0_59, %c0_60, %c0_61] : memref<2x32x64xbf16, #tpu.memory_space<vmem>>, vector<1x32x64xbf16>
    %174 = vector.shape_cast %173 : vector<1x32x64xbf16> to vector<32x64xbf16>
    %175 = arith.truncf %172 : vector<16x32xf32> to vector<16x32xbf16>
    %cst_62 = arith.constant dense<0.000000e+00> : vector<16x64xf32>
    %176 = tpu.matmul %175, %174, %cst_62 {dimension_numbers = #tpu.dot_dimension_numbers<[1], [0], [0], [1], [0, 0, 1, 1], [], []>} : vector<16x32xbf16>, vector<32x64xbf16>, vector<16x64xf32> -> vector<16x64xf32>
    %c0_63 = arith.constant 0 : index
    %c0_64 = arith.constant 0 : index
    %c0_65 = arith.constant 0 : index
    %177 = vector.load %arg11[%c0_63, %c0_64, %c0_65] : memref<2x1x64xf32, #tpu.memory_space<vmem>>, vector<1x1x64xf32>
    %178 = vector.shape_cast %177 : vector<1x1x64xf32> to vector<1x64xf32>
    %179 = vector.broadcast %178 : vector<1x64xf32> to vector<16x64xf32>
    %180 = arith.addf %176, %179 : vector<16x64xf32>
    %181 = arith.mulf %180, %180 : vector<16x64xf32>
    %182 = arith.mulf %180, %181 : vector<16x64xf32>
    %cst_66 = arith.constant 4.471500e-02 : f32
    %183 = vector.broadcast %cst_66 : f32 to vector<16x64xf32>
    %184 = arith.mulf %183, %182 : vector<16x64xf32>
    %185 = arith.addf %180, %184 : vector<16x64xf32>
    %cst_67 = arith.constant 0.797884583 : f32
    %186 = vector.broadcast %cst_67 : f32 to vector<16x64xf32>
    %187 = arith.mulf %186, %185 : vector<16x64xf32>
    %188 = math.tanh %187 : vector<16x64xf32>
    %cst_68 = arith.constant 1.000000e+00 : f32
    %189 = vector.broadcast %cst_68 : f32 to vector<16x64xf32>
    %190 = arith.addf %189, %188 : vector<16x64xf32>
    %cst_69 = arith.constant 5.000000e-01 : f32
    %191 = vector.broadcast %cst_69 : f32 to vector<16x64xf32>
    %192 = arith.mulf %191, %190 : vector<16x64xf32>
    %193 = arith.mulf %180, %192 : vector<16x64xf32>
    %c0_70 = arith.constant 0 : index
    %c0_71 = arith.constant 0 : index
    %c0_72 = arith.constant 0 : index
    %194 = vector.load %arg12[%c0_70, %c0_71, %c0_72] : memref<2x64x32xbf16, #tpu.memory_space<vmem>>, vector<1x64x32xbf16>
    %195 = vector.shape_cast %194 : vector<1x64x32xbf16> to vector<64x32xbf16>
    %196 = arith.truncf %193 : vector<16x64xf32> to vector<16x64xbf16>
    %cst_73 = arith.constant dense<0.000000e+00> : vector<16x32xf32>
    %197 = tpu.matmul %196, %195, %cst_73 {dimension_numbers = #tpu.dot_dimension_numbers<[1], [0], [0], [1], [0, 0, 1, 1], [], []>} : vector<16x64xbf16>, vector<64x32xbf16>, vector<16x32xf32> -> vector<16x32xf32>
    %c0_74 = arith.constant 0 : index
    %c0_75 = arith.constant 0 : index
    %c0_76 = arith.constant 0 : index
    %198 = vector.load %arg13[%c0_74, %c0_75, %c0_76] : memref<2x1x32xf32, #tpu.memory_space<vmem>>, vector<1x1x32xf32>
    %199 = vector.shape_cast %198 : vector<1x1x32xf32> to vector<1x32xf32>
    %200 = vector.broadcast %199 : vector<1x32xf32> to vector<16x32xf32>
    %201 = arith.addf %197, %200 : vector<16x32xf32>
    %202 = arith.addf %172, %201 : vector<16x32xf32>
    %c0_77 = arith.constant 0 : index
    %c0_78 = arith.constant 0 : index
    %c0_79 = arith.constant 0 : index
    %203 = vector.load %arg14[%c0_77, %c0_78, %c0_79] : memref<2x1x32xf32, #tpu.memory_space<vmem>>, vector<1x1x32xf32>
    %204 = vector.shape_cast %203 : vector<1x1x32xf32> to vector<1x32xf32>
    %c0_80 = arith.constant 0 : index
    %c0_81 = arith.constant 0 : index
    %c0_82 = arith.constant 0 : index
    %205 = vector.load %arg15[%c0_80, %c0_81, %c0_82] : memref<2x1x32xf32, #tpu.memory_space<vmem>>, vector<1x1x32xf32>
    %206 = vector.shape_cast %205 : vector<1x1x32xf32> to vector<1x32xf32>
    %cst_83 = arith.constant dense<0.000000e+00> : vector<16xf32>
    %207 = vector.multi_reduction <add>, %202, %cst_83 [1] : vector<16x32xf32> to vector<16xf32>
    %208 = vector.shape_cast %207 : vector<16xf32> to vector<16x1xf32>
    %cst_84 = arith.constant 3.200000e+01 : f32
    %209 = vector.broadcast %cst_84 : f32 to vector<16x1xf32>
    %210 = arith.divf %208, %209 : vector<16x1xf32>
    %211 = vector.broadcast %210 : vector<16x1xf32> to vector<16x32xf32>
    %212 = arith.subf %202, %211 : vector<16x32xf32>
    %213 = arith.mulf %212, %212 : vector<16x32xf32>
    %cst_85 = arith.constant dense<0.000000e+00> : vector<16xf32>
    %214 = vector.multi_reduction <add>, %213, %cst_85 [1] : vector<16x32xf32> to vector<16xf32>
    %215 = vector.shape_cast %214 : vector<16xf32> to vector<16x1xf32>
    %cst_86 = arith.constant 3.200000e+01 : f32
    %216 = vector.broadcast %cst_86 : f32 to vector<16x1xf32>
    %217 = arith.divf %215, %216 : vector<16x1xf32>
    %218 = vector.broadcast %210 : vector<16x1xf32> to vector<16x32xf32>
    %219 = arith.subf %202, %218 : vector<16x32xf32>
    %cst_87 = arith.constant 9.99999996E-13 : f32
    %220 = vector.broadcast %cst_87 : f32 to vector<16x1xf32>
    %221 = arith.addf %217, %220 : vector<16x1xf32>
    %222 = math.rsqrt %221 : vector<16x1xf32>
    %223 = vector.broadcast %222 : vector<16x1xf32> to vector<16x32xf32>
    %224 = arith.mulf %219, %223 : vector<16x32xf32>
    %225 = vector.broadcast %204 : vector<1x32xf32> to vector<16x32xf32>
    %226 = arith.mulf %224, %225 : vector<16x32xf32>
    %227 = vector.broadcast %206 : vector<1x32xf32> to vector<16x32xf32>
    %228 = arith.addf %226, %227 : vector<16x32xf32>
    %c1 = arith.constant 1 : index
    %c0_88 = arith.constant 0 : index
    %c0_89 = arith.constant 0 : index
    %229 = vector.load %arg4[%c1, %c0_88, %c0_89] : memref<2x32x96xbf16, #tpu.memory_space<vmem>>, vector<1x32x96xbf16>
    %230 = vector.shape_cast %229 : vector<1x32x96xbf16> to vector<32x96xbf16>
    %231 = arith.truncf %228 : vector<16x32xf32> to vector<16x32xbf16>
    %cst_90 = arith.constant dense<0.000000e+00> : vector<16x96xf32>
    %232 = tpu.matmul %231, %230, %cst_90 {dimension_numbers = #tpu.dot_dimension_numbers<[1], [0], [0], [1], [0, 0, 1, 1], [], []>} : vector<16x32xbf16>, vector<32x96xbf16>, vector<16x96xf32> -> vector<16x96xf32>
    %c1_91 = arith.constant 1 : index
    %c0_92 = arith.constant 0 : index
    %c0_93 = arith.constant 0 : index
    %233 = vector.load %arg5[%c1_91, %c0_92, %c0_93] : memref<2x1x96xf32, #tpu.memory_space<vmem>>, vector<1x1x96xf32>
    %234 = vector.shape_cast %233 : vector<1x1x96xf32> to vector<1x96xf32>
    %235 = vector.broadcast %234 : vector<1x96xf32> to vector<16x96xf32>
    %236 = arith.addf %232, %235 : vector<16x96xf32>
    %237 = vector.extract_strided_slice %236 {offsets = [0, 0], sizes = [16, 32], strides = [1, 1]} : vector<16x96xf32> to vector<16x32xf32>
    %238 = vector.shape_cast %237 : vector<16x32xf32> to vector<2x8x32xf32>
    %239 = vector.extract_strided_slice %236 {offsets = [0, 32], sizes = [16, 32], strides = [1, 1]} : vector<16x96xf32> to vector<16x32xf32>
    %240 = vector.shape_cast %239 : vector<16x32xf32> to vector<2x8x32xf32>
    %241 = vector.extract_strided_slice %236 {offsets = [0, 64], sizes = [16, 32], strides = [1, 1]} : vector<16x96xf32> to vector<16x32xf32>
    %242 = vector.shape_cast %241 : vector<16x32xf32> to vector<2x8x32xf32>
    %243 = vector.extract_strided_slice %238 {offsets = [0, 0, 0], sizes = [2, 8, 8], strides = [1, 1, 1]} : vector<2x8x32xf32> to vector<2x8x8xf32>
    %244 = arith.truncf %243 : vector<2x8x8xf32> to vector<2x8x8xbf16>
    %245 = vector.extract_strided_slice %240 {offsets = [0, 0, 0], sizes = [2, 8, 8], strides = [1, 1, 1]} : vector<2x8x32xf32> to vector<2x8x8xf32>
    %246 = arith.truncf %245 : vector<2x8x8xf32> to vector<2x8x8xbf16>
    %247 = vector.extract_strided_slice %242 {offsets = [0, 0, 0], sizes = [2, 8, 8], strides = [1, 1, 1]} : vector<2x8x32xf32> to vector<2x8x8xf32>
    %248 = arith.truncf %247 : vector<2x8x8xf32> to vector<2x8x8xbf16>
    "tpu.trace_start"() <{level = 10 : i32, message = "bqd,bkd->bqk"}> : () -> ()
    %cst_94 = arith.constant dense<0.000000e+00> : vector<2x8x8xf32>
    %249 = tpu.matmul %244, %246, %cst_94 {dimension_numbers = #tpu.dot_dimension_numbers<[2], [2], [1], [1], [0, 0, 0, 1, 1, 1], [0], [0]>} : vector<2x8x8xbf16>, vector<2x8x8xbf16>, vector<2x8x8xf32> -> vector<2x8x8xf32>
    "tpu.trace_stop"() : () -> ()
    %cst_95 = arith.constant 0.353553385 : f32
    %250 = vector.broadcast %cst_95 : f32 to vector<2x8x8xf32>
    %251 = arith.mulf %249, %250 : vector<2x8x8xf32>
    %252 = vector.broadcast %29 : vector<2x1x8xf32> to vector<2x8x8xf32>
    %253 = arith.addf %251, %252 : vector<2x8x8xf32>
    %cst_96 = arith.constant dense<0xFF800000> : vector<2x8xf32>
    %254 = vector.multi_reduction <maximumf>, %253, %cst_96 [2] : vector<2x8x8xf32> to vector<2x8xf32>
    %255 = vector.shape_cast %254 : vector<2x8xf32> to vector<2x8x1xf32>
    %256 = vector.broadcast %255 : vector<2x8x1xf32> to vector<2x8x8xf32>
    %257 = arith.subf %253, %256 : vector<2x8x8xf32>
    %258 = math.exp %257 : vector<2x8x8xf32>
    %cst_97 = arith.constant dense<0.000000e+00> : vector<2x8xf32>
    %259 = vector.multi_reduction <add>, %258, %cst_97 [2] : vector<2x8x8xf32> to vector<2x8xf32>
    %260 = vector.shape_cast %259 : vector<2x8xf32> to vector<2x8x1xf32>
    %261 = tpu.reciprocal %260 {approx = true} : vector<2x8x1xf32> -> vector<2x8x1xf32>
    %262 = vector.broadcast %261 : vector<2x8x1xf32> to vector<2x8x8xf32>
    %263 = arith.mulf %258, %262 : vector<2x8x8xf32>
    %264 = arith.truncf %263 : vector<2x8x8xf32> to vector<2x8x8xbf16>
    "tpu.trace_start"() <{level = 10 : i32, message = "bqk,bkd->bqd"}> : () -> ()
    %cst_98 = arith.constant dense<0.000000e+00> : vector<2x8x8xf32>
    %265 = tpu.matmul %264, %248, %cst_98 {dimension_numbers = #tpu.dot_dimension_numbers<[2], [1], [1], [2], [0, 0, 0, 1, 1, 2], [0], [0]>} : vector<2x8x8xbf16>, vector<2x8x8xbf16>, vector<2x8x8xf32> -> vector<2x8x8xf32>
    "tpu.trace_stop"() : () -> ()
    %266 = vector.extract_strided_slice %238 {offsets = [0, 0, 8], sizes = [2, 8, 8], strides = [1, 1, 1]} : vector<2x8x32xf32> to vector<2x8x8xf32>
    %267 = arith.truncf %266 : vector<2x8x8xf32> to vector<2x8x8xbf16>
    %268 = vector.extract_strided_slice %240 {offsets = [0, 0, 8], sizes = [2, 8, 8], strides = [1, 1, 1]} : vector<2x8x32xf32> to vector<2x8x8xf32>
    %269 = arith.truncf %268 : vector<2x8x8xf32> to vector<2x8x8xbf16>
    %270 = vector.extract_strided_slice %242 {offsets = [0, 0, 8], sizes = [2, 8, 8], strides = [1, 1, 1]} : vector<2x8x32xf32> to vector<2x8x8xf32>
    %271 = arith.truncf %270 : vector<2x8x8xf32> to vector<2x8x8xbf16>
    "tpu.trace_start"() <{level = 10 : i32, message = "bqd,bkd->bqk"}> : () -> ()
    %cst_99 = arith.constant dense<0.000000e+00> : vector<2x8x8xf32>
    %272 = tpu.matmul %267, %269, %cst_99 {dimension_numbers = #tpu.dot_dimension_numbers<[2], [2], [1], [1], [0, 0, 0, 1, 1, 1], [0], [0]>} : vector<2x8x8xbf16>, vector<2x8x8xbf16>, vector<2x8x8xf32> -> vector<2x8x8xf32>
    "tpu.trace_stop"() : () -> ()
    %cst_100 = arith.constant 0.353553385 : f32
    %273 = vector.broadcast %cst_100 : f32 to vector<2x8x8xf32>
    %274 = arith.mulf %272, %273 : vector<2x8x8xf32>
    %275 = vector.broadcast %29 : vector<2x1x8xf32> to vector<2x8x8xf32>
    %276 = arith.addf %274, %275 : vector<2x8x8xf32>
    %cst_101 = arith.constant dense<0xFF800000> : vector<2x8xf32>
    %277 = vector.multi_reduction <maximumf>, %276, %cst_101 [2] : vector<2x8x8xf32> to vector<2x8xf32>
    %278 = vector.shape_cast %277 : vector<2x8xf32> to vector<2x8x1xf32>
    %279 = vector.broadcast %278 : vector<2x8x1xf32> to vector<2x8x8xf32>
    %280 = arith.subf %276, %279 : vector<2x8x8xf32>
    %281 = math.exp %280 : vector<2x8x8xf32>
    %cst_102 = arith.constant dense<0.000000e+00> : vector<2x8xf32>
    %282 = vector.multi_reduction <add>, %281, %cst_102 [2] : vector<2x8x8xf32> to vector<2x8xf32>
    %283 = vector.shape_cast %282 : vector<2x8xf32> to vector<2x8x1xf32>
    %284 = tpu.reciprocal %283 {approx = true} : vector<2x8x1xf32> -> vector<2x8x1xf32>
    %285 = vector.broadcast %284 : vector<2x8x1xf32> to vector<2x8x8xf32>
    %286 = arith.mulf %281, %285 : vector<2x8x8xf32>
    %287 = arith.truncf %286 : vector<2x8x8xf32> to vector<2x8x8xbf16>
    "tpu.trace_start"() <{level = 10 : i32, message = "bqk,bkd->bqd"}> : () -> ()
    %cst_103 = arith.constant dense<0.000000e+00> : vector<2x8x8xf32>
    %288 = tpu.matmul %287, %271, %cst_103 {dimension_numbers = #tpu.dot_dimension_numbers<[2], [1], [1], [2], [0, 0, 0, 1, 1, 2], [0], [0]>} : vector<2x8x8xbf16>, vector<2x8x8xbf16>, vector<2x8x8xf32> -> vector<2x8x8xf32>
    "tpu.trace_stop"() : () -> ()
    %289 = vector.extract_strided_slice %238 {offsets = [0, 0, 16], sizes = [2, 8, 8], strides = [1, 1, 1]} : vector<2x8x32xf32> to vector<2x8x8xf32>
    %290 = arith.truncf %289 : vector<2x8x8xf32> to vector<2x8x8xbf16>
    %291 = vector.extract_strided_slice %240 {offsets = [0, 0, 16], sizes = [2, 8, 8], strides = [1, 1, 1]} : vector<2x8x32xf32> to vector<2x8x8xf32>
    %292 = arith.truncf %291 : vector<2x8x8xf32> to vector<2x8x8xbf16>
    %293 = vector.extract_strided_slice %242 {offsets = [0, 0, 16], sizes = [2, 8, 8], strides = [1, 1, 1]} : vector<2x8x32xf32> to vector<2x8x8xf32>
    %294 = arith.truncf %293 : vector<2x8x8xf32> to vector<2x8x8xbf16>
    "tpu.trace_start"() <{level = 10 : i32, message = "bqd,bkd->bqk"}> : () -> ()
    %cst_104 = arith.constant dense<0.000000e+00> : vector<2x8x8xf32>
    %295 = tpu.matmul %290, %292, %cst_104 {dimension_numbers = #tpu.dot_dimension_numbers<[2], [2], [1], [1], [0, 0, 0, 1, 1, 1], [0], [0]>} : vector<2x8x8xbf16>, vector<2x8x8xbf16>, vector<2x8x8xf32> -> vector<2x8x8xf32>
    "tpu.trace_stop"() : () -> ()
    %cst_105 = arith.constant 0.353553385 : f32
    %296 = vector.broadcast %cst_105 : f32 to vector<2x8x8xf32>
    %297 = arith.mulf %295, %296 : vector<2x8x8xf32>
    %298 = vector.broadcast %29 : vector<2x1x8xf32> to vector<2x8x8xf32>
    %299 = arith.addf %297, %298 : vector<2x8x8xf32>
    %cst_106 = arith.constant dense<0xFF800000> : vector<2x8xf32>
    %300 = vector.multi_reduction <maximumf>, %299, %cst_106 [2] : vector<2x8x8xf32> to vector<2x8xf32>
    %301 = vector.shape_cast %300 : vector<2x8xf32> to vector<2x8x1xf32>
    %302 = vector.broadcast %301 : vector<2x8x1xf32> to vector<2x8x8xf32>
    %303 = arith.subf %299, %302 : vector<2x8x8xf32>
    %304 = math.exp %303 : vector<2x8x8xf32>
    %cst_107 = arith.constant dense<0.000000e+00> : vector<2x8xf32>
    %305 = vector.multi_reduction <add>, %304, %cst_107 [2] : vector<2x8x8xf32> to vector<2x8xf32>
    %306 = vector.shape_cast %305 : vector<2x8xf32> to vector<2x8x1xf32>
    %307 = tpu.reciprocal %306 {approx = true} : vector<2x8x1xf32> -> vector<2x8x1xf32>
    %308 = vector.broadcast %307 : vector<2x8x1xf32> to vector<2x8x8xf32>
    %309 = arith.mulf %304, %308 : vector<2x8x8xf32>
    %310 = arith.truncf %309 : vector<2x8x8xf32> to vector<2x8x8xbf16>
    "tpu.trace_start"() <{level = 10 : i32, message = "bqk,bkd->bqd"}> : () -> ()
    %cst_108 = arith.constant dense<0.000000e+00> : vector<2x8x8xf32>
    %311 = tpu.matmul %310, %294, %cst_108 {dimension_numbers = #tpu.dot_dimension_numbers<[2], [1], [1], [2], [0, 0, 0, 1, 1, 2], [0], [0]>} : vector<2x8x8xbf16>, vector<2x8x8xbf16>, vector<2x8x8xf32> -> vector<2x8x8xf32>
    "tpu.trace_stop"() : () -> ()
    %312 = vector.extract_strided_slice %238 {offsets = [0, 0, 24], sizes = [2, 8, 8], strides = [1, 1, 1]} : vector<2x8x32xf32> to vector<2x8x8xf32>
    %313 = arith.truncf %312 : vector<2x8x8xf32> to vector<2x8x8xbf16>
    %314 = vector.extract_strided_slice %240 {offsets = [0, 0, 24], sizes = [2, 8, 8], strides = [1, 1, 1]} : vector<2x8x32xf32> to vector<2x8x8xf32>
    %315 = arith.truncf %314 : vector<2x8x8xf32> to vector<2x8x8xbf16>
    %316 = vector.extract_strided_slice %242 {offsets = [0, 0, 24], sizes = [2, 8, 8], strides = [1, 1, 1]} : vector<2x8x32xf32> to vector<2x8x8xf32>
    %317 = arith.truncf %316 : vector<2x8x8xf32> to vector<2x8x8xbf16>
    "tpu.trace_start"() <{level = 10 : i32, message = "bqd,bkd->bqk"}> : () -> ()
    %cst_109 = arith.constant dense<0.000000e+00> : vector<2x8x8xf32>
    %318 = tpu.matmul %313, %315, %cst_109 {dimension_numbers = #tpu.dot_dimension_numbers<[2], [2], [1], [1], [0, 0, 0, 1, 1, 1], [0], [0]>} : vector<2x8x8xbf16>, vector<2x8x8xbf16>, vector<2x8x8xf32> -> vector<2x8x8xf32>
    "tpu.trace_stop"() : () -> ()
    %cst_110 = arith.constant 0.353553385 : f32
    %319 = vector.broadcast %cst_110 : f32 to vector<2x8x8xf32>
    %320 = arith.mulf %318, %319 : vector<2x8x8xf32>
    %321 = vector.broadcast %29 : vector<2x1x8xf32> to vector<2x8x8xf32>
    %322 = arith.addf %320, %321 : vector<2x8x8xf32>
    %cst_111 = arith.constant dense<0xFF800000> : vector<2x8xf32>
    %323 = vector.multi_reduction <maximumf>, %322, %cst_111 [2] : vector<2x8x8xf32> to vector<2x8xf32>
    %324 = vector.shape_cast %323 : vector<2x8xf32> to vector<2x8x1xf32>
    %325 = vector.broadcast %324 : vector<2x8x1xf32> to vector<2x8x8xf32>
    %326 = arith.subf %322, %325 : vector<2x8x8xf32>
    %327 = math.exp %326 : vector<2x8x8xf32>
    %cst_112 = arith.constant dense<0.000000e+00> : vector<2x8xf32>
    %328 = vector.multi_reduction <add>, %327, %cst_112 [2] : vector<2x8x8xf32> to vector<2x8xf32>
    %329 = vector.shape_cast %328 : vector<2x8xf32> to vector<2x8x1xf32>
    %330 = tpu.reciprocal %329 {approx = true} : vector<2x8x1xf32> -> vector<2x8x1xf32>
    %331 = vector.broadcast %330 : vector<2x8x1xf32> to vector<2x8x8xf32>
    %332 = arith.mulf %327, %331 : vector<2x8x8xf32>
    %333 = arith.truncf %332 : vector<2x8x8xf32> to vector<2x8x8xbf16>
    "tpu.trace_start"() <{level = 10 : i32, message = "bqk,bkd->bqd"}> : () -> ()
    %cst_113 = arith.constant dense<0.000000e+00> : vector<2x8x8xf32>
    %334 = tpu.matmul %333, %317, %cst_113 {dimension_numbers = #tpu.dot_dimension_numbers<[2], [1], [1], [2], [0, 0, 0, 1, 1, 2], [0], [0]>} : vector<2x8x8xbf16>, vector<2x8x8xbf16>, vector<2x8x8xf32> -> vector<2x8x8xf32>
    "tpu.trace_stop"() : () -> ()
    %335 = tpu.concatenate %265, %288, %311, %334 in 2 : vector<2x8x8xf32>, vector<2x8x8xf32>, vector<2x8x8xf32>, vector<2x8x8xf32> -> vector<2x8x32xf32>
    %336 = vector.shape_cast %335 : vector<2x8x32xf32> to vector<16x32xf32>
    %c1_114 = arith.constant 1 : index
    %c0_115 = arith.constant 0 : index
    %c0_116 = arith.constant 0 : index
    %337 = vector.load %arg6[%c1_114, %c0_115, %c0_116] : memref<2x32x32xbf16, #tpu.memory_space<vmem>>, vector<1x32x32xbf16>
    %338 = vector.shape_cast %337 : vector<1x32x32xbf16> to vector<32x32xbf16>
    %339 = arith.truncf %336 : vector<16x32xf32> to vector<16x32xbf16>
    %cst_117 = arith.constant dense<0.000000e+00> : vector<16x32xf32>
    %340 = tpu.matmul %339, %338, %cst_117 {dimension_numbers = #tpu.dot_dimension_numbers<[1], [0], [0], [1], [0, 0, 1, 1], [], []>} : vector<16x32xbf16>, vector<32x32xbf16>, vector<16x32xf32> -> vector<16x32xf32>
    %c1_118 = arith.constant 1 : index
    %c0_119 = arith.constant 0 : index
    %c0_120 = arith.constant 0 : index
    %341 = vector.load %arg7[%c1_118, %c0_119, %c0_120] : memref<2x1x32xf32, #tpu.memory_space<vmem>>, vector<1x1x32xf32>
    %342 = vector.shape_cast %341 : vector<1x1x32xf32> to vector<1x32xf32>
    %343 = vector.broadcast %342 : vector<1x32xf32> to vector<16x32xf32>
    %344 = arith.addf %340, %343 : vector<16x32xf32>
    %345 = arith.addf %228, %344 : vector<16x32xf32>
    %c1_121 = arith.constant 1 : index
    %c0_122 = arith.constant 0 : index
    %c0_123 = arith.constant 0 : index
    %346 = vector.load %arg8[%c1_121, %c0_122, %c0_123] : memref<2x1x32xf32, #tpu.memory_space<vmem>>, vector<1x1x32xf32>
    %347 = vector.shape_cast %346 : vector<1x1x32xf32> to vector<1x32xf32>
    %c1_124 = arith.constant 1 : index
    %c0_125 = arith.constant 0 : index
    %c0_126 = arith.constant 0 : index
    %348 = vector.load %arg9[%c1_124, %c0_125, %c0_126] : memref<2x1x32xf32, #tpu.memory_space<vmem>>, vector<1x1x32xf32>
    %349 = vector.shape_cast %348 : vector<1x1x32xf32> to vector<1x32xf32>
    %cst_127 = arith.constant dense<0.000000e+00> : vector<16xf32>
    %350 = vector.multi_reduction <add>, %345, %cst_127 [1] : vector<16x32xf32> to vector<16xf32>
    %351 = vector.shape_cast %350 : vector<16xf32> to vector<16x1xf32>
    %cst_128 = arith.constant 3.200000e+01 : f32
    %352 = vector.broadcast %cst_128 : f32 to vector<16x1xf32>
    %353 = arith.divf %351, %352 : vector<16x1xf32>
    %354 = vector.broadcast %353 : vector<16x1xf32> to vector<16x32xf32>
    %355 = arith.subf %345, %354 : vector<16x32xf32>
    %356 = arith.mulf %355, %355 : vector<16x32xf32>
    %cst_129 = arith.constant dense<0.000000e+00> : vector<16xf32>
    %357 = vector.multi_reduction <add>, %356, %cst_129 [1] : vector<16x32xf32> to vector<16xf32>
    %358 = vector.shape_cast %357 : vector<16xf32> to vector<16x1xf32>
    %cst_130 = arith.constant 3.200000e+01 : f32
    %359 = vector.broadcast %cst_130 : f32 to vector<16x1xf32>
    %360 = arith.divf %358, %359 : vector<16x1xf32>
    %361 = vector.broadcast %353 : vector<16x1xf32> to vector<16x32xf32>
    %362 = arith.subf %345, %361 : vector<16x32xf32>
    %cst_131 = arith.constant 9.99999996E-13 : f32
    %363 = vector.broadcast %cst_131 : f32 to vector<16x1xf32>
    %364 = arith.addf %360, %363 : vector<16x1xf32>
    %365 = math.rsqrt %364 : vector<16x1xf32>
    %366 = vector.broadcast %365 : vector<16x1xf32> to vector<16x32xf32>
    %367 = arith.mulf %362, %366 : vector<16x32xf32>
    %368 = vector.broadcast %347 : vector<1x32xf32> to vector<16x32xf32>
    %369 = arith.mulf %367, %368 : vector<16x32xf32>
    %370 = vector.broadcast %349 : vector<1x32xf32> to vector<16x32xf32>
    %371 = arith.addf %369, %370 : vector<16x32xf32>
    %c1_132 = arith.constant 1 : index
    %c0_133 = arith.constant 0 : index
    %c0_134 = arith.constant 0 : index
    %372 = vector.load %arg10[%c1_132, %c0_133, %c0_134] : memref<2x32x64xbf16, #tpu.memory_space<vmem>>, vector<1x32x64xbf16>
    %373 = vector.shape_cast %372 : vector<1x32x64xbf16> to vector<32x64xbf16>
    %374 = arith.truncf %371 : vector<16x32xf32> to vector<16x32xbf16>
    %cst_135 = arith.constant dense<0.000000e+00> : vector<16x64xf32>
    %375 = tpu.matmul %374, %373, %cst_135 {dimension_numbers = #tpu.dot_dimension_numbers<[1], [0], [0], [1], [0, 0, 1, 1], [], []>} : vector<16x32xbf16>, vector<32x64xbf16>, vector<16x64xf32> -> vector<16x64xf32>
    %c1_136 = arith.constant 1 : index
    %c0_137 = arith.constant 0 : index
    %c0_138 = arith.constant 0 : index
    %376 = vector.load %arg11[%c1_136, %c0_137, %c0_138] : memref<2x1x64xf32, #tpu.memory_space<vmem>>, vector<1x1x64xf32>
    %377 = vector.shape_cast %376 : vector<1x1x64xf32> to vector<1x64xf32>
    %378 = vector.broadcast %377 : vector<1x64xf32> to vector<16x64xf32>
    %379 = arith.addf %375, %378 : vector<16x64xf32>
    %380 = arith.mulf %379, %379 : vector<16x64xf32>
    %381 = arith.mulf %379, %380 : vector<16x64xf32>
    %cst_139 = arith.constant 4.471500e-02 : f32
    %382 = vector.broadcast %cst_139 : f32 to vector<16x64xf32>
    %383 = arith.mulf %382, %381 : vector<16x64xf32>
    %384 = arith.addf %379, %383 : vector<16x64xf32>
    %cst_140 = arith.constant 0.797884583 : f32
    %385 = vector.broadcast %cst_140 : f32 to vector<16x64xf32>
    %386 = arith.mulf %385, %384 : vector<16x64xf32>
    %387 = math.tanh %386 : vector<16x64xf32>
    %cst_141 = arith.constant 1.000000e+00 : f32
    %388 = vector.broadcast %cst_141 : f32 to vector<16x64xf32>
    %389 = arith.addf %388, %387 : vector<16x64xf32>
    %cst_142 = arith.constant 5.000000e-01 : f32
    %390 = vector.broadcast %cst_142 : f32 to vector<16x64xf32>
    %391 = arith.mulf %390, %389 : vector<16x64xf32>
    %392 = arith.mulf %379, %391 : vector<16x64xf32>
    %c1_143 = arith.constant 1 : index
    %c0_144 = arith.constant 0 : index
    %c0_145 = arith.constant 0 : index
    %393 = vector.load %arg12[%c1_143, %c0_144, %c0_145] : memref<2x64x32xbf16, #tpu.memory_space<vmem>>, vector<1x64x32xbf16>
    %394 = vector.shape_cast %393 : vector<1x64x32xbf16> to vector<64x32xbf16>
    %395 = arith.truncf %392 : vector<16x64xf32> to vector<16x64xbf16>
    %cst_146 = arith.constant dense<0.000000e+00> : vector<16x32xf32>
    %396 = tpu.matmul %395, %394, %cst_146 {dimension_numbers = #tpu.dot_dimension_numbers<[1], [0], [0], [1], [0, 0, 1, 1], [], []>} : vector<16x64xbf16>, vector<64x32xbf16>, vector<16x32xf32> -> vector<16x32xf32>
    %c1_147 = arith.constant 1 : index
    %c0_148 = arith.constant 0 : index
    %c0_149 = arith.constant 0 : index
    %397 = vector.load %arg13[%c1_147, %c0_148, %c0_149] : memref<2x1x32xf32, #tpu.memory_space<vmem>>, vector<1x1x32xf32>
    %398 = vector.shape_cast %397 : vector<1x1x32xf32> to vector<1x32xf32>
    %399 = vector.broadcast %398 : vector<1x32xf32> to vector<16x32xf32>
    %400 = arith.addf %396, %399 : vector<16x32xf32>
    %401 = arith.addf %371, %400 : vector<16x32xf32>
    %c1_150 = arith.constant 1 : index
    %c0_151 = arith.constant 0 : index
    %c0_152 = arith.constant 0 : index
    %402 = vector.load %arg14[%c1_150, %c0_151, %c0_152] : memref<2x1x32xf32, #tpu.memory_space<vmem>>, vector<1x1x32xf32>
    %403 = vector.shape_cast %402 : vector<1x1x32xf32> to vector<1x32xf32>
    %c1_153 = arith.constant 1 : index
    %c0_154 = arith.constant 0 : index
    %c0_155 = arith.constant 0 : index
    %404 = vector.load %arg15[%c1_153, %c0_154, %c0_155] : memref<2x1x32xf32, #tpu.memory_space<vmem>>, vector<1x1x32xf32>
    %405 = vector.shape_cast %404 : vector<1x1x32xf32> to vector<1x32xf32>
    %cst_156 = arith.constant dense<0.000000e+00> : vector<16xf32>
    %406 = vector.multi_reduction <add>, %401, %cst_156 [1] : vector<16x32xf32> to vector<16xf32>
    %407 = vector.shape_cast %406 : vector<16xf32> to vector<16x1xf32>
    %cst_157 = arith.constant 3.200000e+01 : f32
    %408 = vector.broadcast %cst_157 : f32 to vector<16x1xf32>
    %409 = arith.divf %407, %408 : vector<16x1xf32>
    %410 = vector.broadcast %409 : vector<16x1xf32> to vector<16x32xf32>
    %411 = arith.subf %401, %410 : vector<16x32xf32>
    %412 = arith.mulf %411, %411 : vector<16x32xf32>
    %cst_158 = arith.constant dense<0.000000e+00> : vector<16xf32>
    %413 = vector.multi_reduction <add>, %412, %cst_158 [1] : vector<16x32xf32> to vector<16xf32>
    %414 = vector.shape_cast %413 : vector<16xf32> to vector<16x1xf32>
    %cst_159 = arith.constant 3.200000e+01 : f32
    %415 = vector.broadcast %cst_159 : f32 to vector<16x1xf32>
    %416 = arith.divf %414, %415 : vector<16x1xf32>
    %417 = vector.broadcast %409 : vector<16x1xf32> to vector<16x32xf32>
    %418 = arith.subf %401, %417 : vector<16x32xf32>
    %cst_160 = arith.constant 9.99999996E-13 : f32
    %419 = vector.broadcast %cst_160 : f32 to vector<16x1xf32>
    %420 = arith.addf %416, %419 : vector<16x1xf32>
    %421 = math.rsqrt %420 : vector<16x1xf32>
    %422 = vector.broadcast %421 : vector<16x1xf32> to vector<16x32xf32>
    %423 = arith.mulf %418, %422 : vector<16x32xf32>
    %424 = vector.broadcast %403 : vector<1x32xf32> to vector<16x32xf32>
    %425 = arith.mulf %423, %424 : vector<16x32xf32>
    %426 = vector.broadcast %405 : vector<1x32xf32> to vector<16x32xf32>
    %427 = arith.addf %425, %426 : vector<16x32xf32>
    %c0_161 = arith.constant 0 : index
    %c0_162 = arith.constant 0 : index
    %428 = vector.load %arg20[%c0_161, %c0_162] : memref<16x32xf32, #tpu.memory_space<vmem>>, vector<16x32xf32>
    tpu.vector_store %arg20[%c0_161, %c0_162], %427 {strides = array<i32>} : memref<16x32xf32, #tpu.memory_space<vmem>>, vector<16x32xf32>,
    %429 = vector.extract_strided_slice %427 {offsets = [0, 0], sizes = [1, 32], strides = [1, 1]} : vector<16x32xf32> to vector<1x32xf32>
    %430 = vector.extract_strided_slice %427 {offsets = [8, 0], sizes = [1, 32], strides = [1, 1]} : vector<16x32xf32> to vector<1x32xf32>
    %431 = tpu.concatenate %429, %430 in 0 : vector<1x32xf32>, vector<1x32xf32> -> vector<2x32xf32>
    %c0_163 = arith.constant 0 : index
    %c0_164 = arith.constant 0 : index
    %432 = vector.load %arg16[%c0_163, %c0_164] : memref<32x32xbf16, #tpu.memory_space<vmem>>, vector<32x32xbf16>
    %433 = arith.truncf %431 : vector<2x32xf32> to vector<2x32xbf16>
    %cst_165 = arith.constant dense<0.000000e+00> : vector<2x32xf32>
    %434 = tpu.matmul %433, %432, %cst_165 {dimension_numbers = #tpu.dot_dimension_numbers<[1], [0], [0], [1], [0, 0, 1, 1], [], []>} : vector<2x32xbf16>, vector<32x32xbf16>, vector<2x32xf32> -> vector<2x32xf32>
    %c0_166 = arith.constant 0 : index
    %c0_167 = arith.constant 0 : index
    %435 = vector.load %arg17[%c0_166, %c0_167] : memref<1x32xf32, #tpu.memory_space<vmem>>, vector<1x32xf32>
    %436 = vector.broadcast %435 : vector<1x32xf32> to vector<2x32xf32>
    %437 = arith.addf %434, %436 : vector<2x32xf32>
    %438 = math.tanh %437 : vector<2x32xf32>
    %c0_168 = arith.constant 0 : index
    %c0_169 = arith.constant 0 : index
    %439 = vector.load %arg18[%c0_168, %c0_169] : memref<32x3xbf16, #tpu.memory_space<vmem>>, vector<32x3xbf16>
    %440 = arith.truncf %438 : vector<2x32xf32> to vector<2x32xbf16>
    %cst_170 = arith.constant dense<0.000000e+00> : vector<2x3xf32>
    %441 = tpu.matmul %440, %439, %cst_170 {dimension_numbers = #tpu.dot_dimension_numbers<[1], [0], [0], [1], [0, 0, 1, 1], [], []>} : vector<2x32xbf16>, vector<32x3xbf16>, vector<2x3xf32> -> vector<2x3xf32>
    %c0_171 = arith.constant 0 : index
    %c0_172 = arith.constant 0 : index
    %442 = vector.load %arg19[%c0_171, %c0_172] : memref<1x3xf32, #tpu.memory_space<vmem>>, vector<1x3xf32>
    %443 = vector.broadcast %442 : vector<1x3xf32> to vector<2x3xf32>
    %444 = arith.addf %441, %443 : vector<2x3xf32>
    %c0_173 = arith.constant 0 : index
    %c0_174 = arith.constant 0 : index
    %445 = vector.load %arg21[%c0_173, %c0_174] : memref<2x3xf32, #tpu.memory_space<vmem>>, vector<2x3xf32>
    tpu.vector_store %arg21[%c0_173, %c0_174], %444 {strides = array<i32>} : memref<2x3xf32, #tpu.memory_space<vmem>>, vector<2x3xf32>,
    return
  }
}

</mosaic_0001>

<bundles_post_ra>
// kernel: tweet_sentiment_forward.1
= control target key start
LH: loop header
LB: loop body
LE: loop exit
PB: predicated region body
PF: predicated region fallthrough
CT: control target
= control target key end

     0   :  { %s4432_s0 = inlined_call_operand.vmem [shape: f32[16,32], index: 0, kind: input, shape index: {}]   ;;  %s4433_s1 = inlined_call_operand.vmem [shape: f32[2,1,8], index: 1, kind: input, shape index: {}]   ;;  %s4434_s2 = inlined_call_operand.vmem [shape: f32[1,32], index: 2, kind: input, shape index: {}]   ;;  %s4435_s3 = inlined_call_operand.vmem [shape: f32[1,32], index: 3, kind: input, shape index: {}]   ;;  %s4436_s4 = inlined_call_operand.vmem [shape: bf16[2,32,96], index: 4, kind: input, shape index: {}]   ;;  %s4437_s5 = inlined_call_operand.vmem [shape: f32[2,1,96], index: 5, kind: input, shape index: {}]   ;;  %s4438_s6 = inlined_call_operand.vmem [shape: bf16[2,32,32], index: 6, kind: input, shape index: {}]   ;;  %s4439_s7 = inlined_call_operand.vmem [shape: f32[2,1,32], index: 7, kind: input, shape index: {}]   ;;  %s4440_s8 = inlined_call_operand.vmem [shape: f32[2,1,32], index: 8, kind: input, shape index: {}]   ;;  %s4441_s9 = inlined_call_operand.vmem [shape: f32[2,1,32], index: 9, kind: input, shape index: {}]   ;;  %s4442_s10 = inlined_call_operand.vmem [shape: bf16[2,32,64], index: 10, kind: input, shape index: {}]   ;;  %s4443_s11 = inlined_call_operand.vmem [shape: f32[2,1,64], index: 11, kind: input, shape index: {}]   ;;  %s4444_s12 = inlined_call_operand.vmem [shape: bf16[2,64,32], index: 12, kind: input, shape index: {}]   ;;  %s4445_s13 = inlined_call_operand.vmem [shape: f32[2,1,32], index: 13, kind: input, shape index: {}]   ;;  %s4446_s14 = inlined_call_operand.vmem [shape: f32[2,1,32], index: 14, kind: input, shape index: {}]   ;;  %s4447_s15 = inlined_call_operand.vmem [shape: f32[2,1,32], index: 15, kind: input, shape index: {}]   ;;  %s4448_s16 = inlined_call_operand.vmem [shape: bf16[32,32], index: 16, kind: input, shape index: {}]   ;;  %s4449_s17 = inlined_call_operand.vmem [shape: f32[1,32], index: 17, kind: input, shape index: {}]   ;;  %s4450_s18 = inlined_call_operand.vmem [shape: bf16[32,3], index: 18, kind: input, shape index: {}]   ;;  %s4451_s19 = inlined_call_operand.vmem [shape: f32[1,3], index: 19, kind: input, shape index: {}]   ;;  %s4452_s20 = inlined_call_operand.hbm [shape: f32[16,32], index: 20, kind: output, shape index: {0}]   ;;  %s4453_s21 = inlined_call_operand.hbm [shape: f32[2,3], index: 21, kind: output, shape index: {1}]  }
   0x1   :  { %4472 = sst [smem:[#allocation8_spill]] %s4432_s0 }
   0x2   :  { %4473 = sst [smem:[#allocation9_spill]] %s4433_s1 }
   0x3   :  { %4474 = sst [smem:[#allocation10_spill]] %s4434_s2 }
   0x4   :  { %4475 = sst [smem:[#allocation11_spill]] %s4435_s3 }
   0x5   :  { %4476 = sst [smem:[#allocation12_spill]] %s4436_s4 }
   0x6   :  { %4477 = sst [smem:[#allocation13_spill]] %s4437_s5 }
   0x7   :  { %27 = vsyncpa [#allocation3], 0  ;;  %s4478_s26 = sld [smem:[#allocation8_spill]]  ;;  %vm74_vm0 = vcmask 261120  }
   0xd   :  { %v70_v0 = vld [vmem:[%s4478_s26] sm:$0xff]  ;;  %v71_v1 = vld [vmem:[%s4478_s26 + $0x8] sm:$0xff] }
   0xe   :  { %v75_v2 = vsel %vm74_vm0, %v70_v0, 0.0  ;;  %v78_v3 = vsel %vm74_vm0, %v71_v1, 0.0 }
   0xf   :  { %76 = vadd.xlane.f32.xlu0 %v75_v2 }
  0x13   :  { %79 = vadd.xlane.f32.xlu0 %v78_v3 }
  0x14   :  { %28 = vsyncpa [#allocation5], 0  ;;  %s4479_s0 = sld [smem:[#allocation12_spill]]  ;;  %v3682_v15 = vmov 0.0   ;;  %vm3683_vm1 = vmmov 0   ;;  %s4480_s23 = sld [smem:[#allocation10_spill]]  ;;  %v297_v47 = vlaneseq }
  0x15   :  { %3187 = vmatprep.subr.bf16.mxu0 %v3682_v15  ;;  %3191 = vmatprep.mubr.msk.bf16.mxu0 %vm3683_vm1, %v3682_v15  ;;  %s4481_s2 = sld [smem:[#allocation11_spill]]  ;;  %s4482_s27 = sld [smem:[#allocation13_spill]]  ;;  %vm197_vm2 = vcmask 64512   ;;  %vm338_vm3 = vcmask 1043456   ;;  %vm1128_vm4 = vcmask 130048   ;;  %vm1131_vm5 = vcmask 195584  }
  0x16   :  { %3195 = vmatprep.subr.bf16.mxu1 %v3682_v15  ;;  %3197 = vmatprep.mubr.msk.bf16.mxu1 %vm3683_vm1, %v3682_v15  ;;  %s3684_s3 = smov 96   ;;  %s4483_s4 = sld [smem:[#allocation9_spill]]  ;;  %v298_v51 = vshrl.u32 %v297_v47, 7  ;;  %vm1374_vm6 = vcmask 523264   ;;  %vm2806_vm7 = vcmask 1040384  }
  0x17   :  { %s3685_s22 = smov 64   ;;  %s3687_s1 = smov 120  }
  0x18   :  { %v299_v54 = vsub.s32 0, %v298_v51  ;;  %s3688_s24 = smov 56   ;;  %s4470_s25 = smov 112  }
  0x19   :  { %s4468_s26 = smov 48   ;;  %s4466_s28 = smov 72  }
  0x1a   :  { %v3516_v14 = vld [vmem:[%s4479_s0] sm:$0xff]   ;;  %v3517_v16 = vld [vmem:[%s4479_s0 + $0x8] sm:$0xff]   ;;  %s4463_s29 = smov 104   ;;  %s4459_s30 = smov 8  }
  0x1b   :  { %3188 = vmatpush3.bf16.msra.mxu0 %v3516_v14  ;;  %v2975_v25 = vld [vmem:[%s4480_s23] ss:$0 sm:$0xff]  ;;  %s3686_s23 = smov 88   ;;  %s4458_s5 = smov 16  }
  0x1c   :  { %3189 = vmatprep.subr.bf16.mxu0 %v3682_v15  ;;  %v2976_v29 = vld [vmem:[%s4481_s2] ss:$0 sm:$0xff]  ;;  %v119_v49 = vld [vmem:[%s4483_s4 + $0x1] sm:$0x1]  ;;  %s3689_s2 = smov 80  }
  0x1d   :  { %v2977_v34 = vld [vmem:[%s4482_s27] ss:$0 sm:$0xff]  ;;  %v121_v52 = vsub.f32 1.0, %v119_v49 }
  0x1e   :  { %v118_v48 = vld [vmem:[%s4483_s4] sm:$0x1]  ;;  %s4461_s4 = smov 40  }
  0x1f   :  { %3190 = vmatpush3.bf16.msra.mxu0 %v3517_v16  ;;  %v120_v50 = vsub.f32 1.0, %v118_v48  ;;  %v123_v55 = vmul.f32 -10000.0, %v121_v52 }
  0x20   :  { %3201 = vmatprep.subr.bf16.mxu0 %v3682_v15 }
  0x21   :  { %v122_v53 = vmul.f32 -10000.0, %v120_v50  ;;  %v3881_v60 = vrot.slane %v123_v55, %v299_v54 }
  0x23   :  { %v3879_v56 = vrot.slane %v122_v53, %v299_v54 }
  0x9c   :  { %v77_v4 = vpop.xlane.xlu0 %76 }
  0x9d   :  { %v82_v5 = vmul.f32 0.03125, %v77_v4 }
  0x9f   :  { %v84_v6 = vsub.f32 %v70_v0, %v82_v5 }
  0xa0   :  { %v80_v7 = vpop.xlane.xlu0 %79 }
  0xa1   :  { %v83_v8 = vmul.f32 0.03125, %v80_v7  ;;  %v86_v9 = vmul.f32 %v84_v6, %v84_v6 }
  0xa3   :  { %v85_v10 = vsub.f32 %v71_v1, %v83_v8  ;;  %v88_v11 = vsel %vm74_vm0, %v86_v9, 0.0 }
  0xa4   :  { %89 = vadd.xlane.f32.xlu1 %v88_v11 }
  0xa5   :  { %v87_v12 = vmul.f32 %v85_v10, %v85_v10 }
  0xa7   :  { %v91_v13 = vsel %vm74_vm0, %v87_v12, 0.0 }
  0xa8   :  { %92 = vadd.xlane.f32.xlu1 %v91_v13 }
 0x131   :  { %v90_v17 = vpop.xlane.xlu1 %89 }
 0x132   :  { %v94_v18 = vmul.f32 0.03125, %v90_v17 }
 0x134   :  { %v96_v19 = vadd.f32 1e-12, %v94_v18 }
 0x135   :  { %v93_v20 = vpop.xlane.xlu1 %92 }
 0x136   :  { %3540 = vrsqrt.f32 %v96_v19  ;;  %v95_v21 = vmul.f32 0.03125, %v93_v20 }
 0x138   :  { %v97_v22 = vadd.f32 1e-12, %v95_v21 }
 0x13a   :  { %3542 = vrsqrt.f32 %v97_v22 }
 0x140   :  { %v3541_v23 = vpop.eup %3540 }
 0x141   :  { %v100_v24 = vmul.f32 %v3541_v23, %v84_v6 }
 0x143   :  { %v108_v28 = vmul.f32 %v2975_v25, %v100_v24 }
 0x144   :  { %v3543_v26 = vpop.eup %3542 }
 0x145   :  { %v101_v27 = vmul.f32 %v3543_v26, %v85_v10  ;;  %v3841_v31 = vadd.f32 %v2976_v29, %v108_v28 }
 0x147   :  { %v109_v30 = vmul.f32 %v2975_v25, %v101_v27 }
 0x149   :  { %v3843_v32 = vadd.f32 %v2976_v29, %v109_v30 }
 0x14b   :  { %v128_v33 = vpack.c.bf16 %v3843_v32, %v3841_v31 }
 0x14d   :  { %3192 = vmatmul.mubr.msk.bf16.vlgmr.msra.gmra.mrb[0].mxu0 %vm74_vm0, %v128_v33 }
 0x14e   :  { %3203 = vmatprep.mubr.msk.bf16.mxu0 %vm3683_vm1, %v3682_v15 }
 0x220   :  { %v185_v35 = vpop.f32.mrb[0].mxu0 }
 0x221   :  { %v186_v36 = vadd.f32 %v2977_v34, %v185_v35  ;;  %v3193_v37 = vpop.f32.mrb[1].mxu0 }
 0x222   :  { %v188_v38 = vpop.f32.mrb[2].mxu0 }
 0x223   :  { %v3853_v39 = vpack.c.bf16 %v186_v36, %v186_v36  ;;  %v189_v40 = vadd.f32 %v2977_v34, %v188_v38  ;;  %v3194_v41 = vpop.f32.mrb[3].mxu0 }
 0x225   :  { %v3855_v42 = vpack.c.bf16 %v189_v40, %v189_v40  ;;  %195 = vrot.lane.b32.xlu0 %v3853_v39, %s3684_s3 }
 0x227   :  { %245 = vrot.lane.b32.xlu1 %v3855_v42, %s3684_s3 }
 0x297   :  { %v196_v43 = vpop.permute.xlu0 %195 }
 0x298   :  { %v202_v44 = vsel %vm197_vm2, %v196_v43, 0 }
 0x299   :  { %3196 = vmatpush3.bf16.xpose.msra.mxu1 %v202_v44  ;;  %v246_v45 = vpop.permute.xlu1 %245 }
 0x29a   :  { %v251_v46 = vsel %vm197_vm2, %v246_v45, 0  ;;  %3207 = vmatprep.subr.bf16.mxu1 %v3682_v15 }
 0x29b   :  { %3202 = vmatpush3.bf16.xpose.msra.mxu0 %v251_v46 }
 0x29c   :  { %3213 = vmatprep.subr.bf16.mxu0 %v3682_v15 }
 0x2a0   :  { %3198 = vmatmul.mubr.msk.bf16.vlgmr.msra.gmra.mrb[0].mxu1 %vm197_vm2, %v3853_v39 }
 0x2a1   :  { %3209 = vmatprep.mubr.msk.bf16.mxu1 %vm3683_vm1, %v3682_v15 }
 0x2a2   :  { %3204 = vmatmul.mubr.msk.bf16.vlgmr.msra.gmra.mrb[4].mxu0 %vm197_vm2, %v3855_v42 }
 0x2a3   :  { %3215 = vmatprep.mubr.msk.bf16.mxu0 %vm3683_vm1, %v3682_v15 }
 0x373   :  { %v238_v57 = vpop.f32.mrb[0].mxu1 }
 0x374   :  { %v293_v58 = vmul.f32 0.35355338, %v238_v57  ;;  %v3199_v59 = vpop.f32.mrb[1].mxu1 }
 0x375   :  { %v241_v61 = vpop.f32.mrb[2].mxu1  ;;  %v287_v62 = vpop.f32.mrb[4].mxu0 }
 0x376   :  { %v294_v63 = vmul.f32 0.35355338, %v287_v62  ;;  %v3200_v0 = vpop.f32.mrb[3].mxu1  ;;  %v3205_v1 = vpop.f32.mrb[5].mxu0  ;;  %v307_v2 = vadd.f32 %v3879_v56, %v293_v58 }
 0x377   :  { %v290_v3 = vpop.f32.mrb[6].mxu0 }
 0x378   :  { %v3206_v4 = vpop.f32.mrb[7].mxu0  ;;  %v309_v5 = vsel %vm197_vm2, %v307_v2, -inf  ;;  %v308_v6 = vadd.f32 %v3881_v60, %v294_v63 }
 0x379   :  { %310 = vmax.xlane.f32.xlu1 %v309_v5 }
 0x37a   :  { %v312_v7 = vsel %vm197_vm2, %v308_v6, -inf }
 0x37b   :  { %313 = vmax.xlane.f32.xlu0 %v312_v7 }
 0x38a   :  { %382 = vrot.lane.b32.xlu1 %v3855_v42, %s3685_s22 }
 0x38e   :  { %432 = vrot.lane.b32.xlu1 %v3853_v39, %s3686_s23 }
 0x406   :  { %v311_v8 = vpop.xlane.xlu1 %310 }
 0x407   :  { %v315_v9 = vsub.f32 %v307_v2, %v311_v8 }
 0x408   :  { %v314_v10 = vpop.xlane.xlu0 %313 }
 0x409   :  { %v317_v11 = vmul.f32 1.442695, %v315_v9  ;;  %v316_v12 = vsub.f32 %v308_v6, %v314_v10 }
 0x40a   :  { %v383_v13 = vpop.permute.xlu1 %382 }
 0x40b   :  { %3544 = vpow2.f32 %v317_v11  ;;  %v319_v14 = vmul.f32 1.442695, %v316_v12  ;;  %v388_v16 = vsel %vm338_vm3, %v383_v13, 0 }
 0x40c   :  { %3214 = vmatpush3.bf16.msra.mxu0 %v388_v16 }
 0x40d   :  { %3546 = vpow2.f32 %v319_v14  ;;  %3225 = vmatprep.subr.bf16.mxu0 %v3682_v15 }
 0x40e   :  { %v433_v21 = vpop.permute.xlu1 %432 }
 0x40f   :  { %v438_v34 = vsel %vm197_vm2, %v433_v21, 0 }
 0x415   :  { %v3545_v17 = vpop.eup %3544 }
 0x416   :  { %v321_v18 = vsel %vm197_vm2, %v3545_v17, 0.0 }
 0x417   :  { %v3547_v19 = vpop.eup %3546  ;;  %322 = vadd.xlane.f32.xlu0 %v321_v18 }
 0x418   :  { %v324_v20 = vsel %vm197_vm2, %v3547_v19, 0.0 }
 0x419   :  { %325 = vadd.xlane.f32.xlu1 %v324_v20 }
 0x42a   :  { %482 = vrot.lane.b32.xlu1 %v3855_v42, %s3686_s23 }
 0x42d   :  { %333 = vrot.lane.b32.xlu0 %v3853_v39, %s3685_s22 }
 0x42e   :  { %480 = vrot.lane.b32.xlu1 %v3855_v42, %s3687_s1 }
 0x431   :  { %430 = vrot.lane.b32.xlu0 %v3853_v39, %s3687_s1 }
 0x4a4   :  { %v323_v22 = vpop.xlane.xlu0 %322 }
 0x4a5   :  { %3548 = vrcp.f32 %v323_v22 }
 0x4a6   :  { %v326_v23 = vpop.xlane.xlu1 %325 }
 0x4a7   :  { %3550 = vrcp.f32 %v326_v23 }
 0x4a8   :  { %v334_v24 = vpop.permute.xlu0 %333 }
 0x4a9   :  { %v340_v25 = vsel %vm338_vm3, %v334_v24, 0 }
 0x4aa   :  { %3208 = vmatpush3.bf16.msra.mxu1 %v340_v25  ;;  %v483_v33 = vpop.permute.xlu1 %482 }
 0x4ab   :  { %3219 = vmatprep.subr.bf16.mxu1 %v3682_v15  ;;  %v488_v36 = vsel %vm197_vm2, %v483_v33, 0 }
 0x4ac   :  { %v431_v37 = vpop.permute.xlu0 %430 }
 0x4ae   :  { %v481_v38 = vpop.permute.xlu1 %480 }
 0x4af   :  { %v3549_v26 = vpop.eup %3548 }
 0x4b0   :  { %v329_v27 = vmul.f32 %v3549_v26, %v3545_v17 }
 0x4b1   :  { %v3551_v28 = vpop.eup %3550 }
 0x4b2   :  { %v330_v29 = vmul.f32 %v3551_v28, %v3547_v19  ;;  %v331_v30 = vpack.c.bf16 %v329_v27, %v329_v27 }
 0x4b4   :  { %3210 = vmatmul.mubr.msk.bf16.vlgmr.msra.gmra.mrb[4].mxu1 %vm197_vm2, %v331_v30  ;;  %v332_v35 = vpack.c.bf16 %v330_v29, %v330_v29 }
 0x4b5   :  { %3220 = vmatpush3.bf16.xpose.msra.mxu1 %v438_v34  ;;  %3221 = vmatprep.mubr.msk.bf16.mxu1 %vm3683_vm1, %v3682_v15 }
 0x4b6   :  { %3216 = vmatmul.mubr.msk.bf16.vlgmr.msra.gmra.mrb[8].mxu0 %vm197_vm2, %v332_v35  ;;  %3231 = vmatprep.subr.bf16.mxu1 %v3682_v15 }
 0x4b7   :  { %3226 = vmatpush3.bf16.xpose.msra.mxu0 %v488_v36  ;;  %3227 = vmatprep.mubr.msk.bf16.mxu0 %vm3683_vm1, %v3682_v15 }
 0x4b8   :  { %3237 = vmatprep.subr.bf16.mxu0 %v3682_v15 }
 0x4bc   :  { %3222 = vmatmul.mubr.msk.bf16.vlgmr.msra.gmra.mrb[8].mxu1 %vm197_vm2, %v431_v37 }
 0x4bd   :  { %3233 = vmatprep.mubr.msk.bf16.mxu1 %vm3683_vm1, %v3682_v15 }
 0x4be   :  { %3228 = vmatmul.mubr.msk.bf16.vlgmr.msra.gmra.mrb[12].mxu0 %vm197_vm2, %v481_v38 }
 0x4bf   :  { %3239 = vmatprep.mubr.msk.bf16.mxu0 %vm3683_vm1, %v3682_v15 }
 0x587   :  { %v3921_v40 = vpop.f32.mrb[4].mxu1 }
 0x588   :  { %v3211_v41 = vpop.f32.mrb[5].mxu1 }
 0x589   :  { %v379_v43 = vpop.f32.mrb[6].mxu1  ;;  %v3923_v44 = vpop.f32.mrb[8].mxu0 }
 0x58a   :  { %v3212_v45 = vpop.f32.mrb[7].mxu1  ;;  %v3217_v46 = vpop.f32.mrb[9].mxu0 }
 0x58b   :  { %v427_v47 = vpop.f32.mrb[10].mxu0 }
 0x58c   :  { %v3218_v48 = vpop.f32.mrb[11].mxu0 }
 0x58f   :  { %v474_v49 = vpop.f32.mrb[8].mxu1 }
 0x590   :  { %v530_v50 = vmul.f32 0.35355338, %v474_v49  ;;  %v3223_v51 = vpop.f32.mrb[9].mxu1 }
 0x591   :  { %v477_v52 = vpop.f32.mrb[10].mxu1  ;;  %v524_v53 = vpop.f32.mrb[12].mxu0 }
 0x592   :  { %v531_v54 = vmul.f32 0.35355338, %v524_v53  ;;  %v3224_v55 = vpop.f32.mrb[11].mxu1  ;;  %v3229_v57 = vpop.f32.mrb[13].mxu0  ;;  %v532_v58 = vadd.f32 %v530_v50, %v3879_v56 }
 0x593   :  { %v527_v59 = vpop.f32.mrb[14].mxu0 }
 0x594   :  { %v3230_v61 = vpop.f32.mrb[15].mxu0  ;;  %v534_v62 = vsel %vm197_vm2, %v532_v58, -inf  ;;  %v533_v63 = vadd.f32 %v531_v54, %v3881_v60 }
 0x595   :  { %535 = vmax.xlane.f32.xlu0 %v534_v62 }
 0x596   :  { %v537_v0 = vsel %vm197_vm2, %v533_v63, -inf }
 0x597   :  { %538 = vmax.xlane.f32.xlu1 %v537_v0 }
 0x5a8   :  { %606 = vrot.lane.b32.xlu1 %v3855_v42, %s3688_s24 }
 0x5ac   :  { %656 = vrot.lane.b32.xlu1 %v3853_v39, %s3689_s2 }
 0x5b0   :  { %706 = vrot.lane.b32.xlu1 %v3855_v42, %s3689_s2 }
 0x5b4   :  { %704 = vrot.lane.b32.xlu1 %v3855_v42, %s4470_s25 }
 0x622   :  { %v536_v1 = vpop.xlane.xlu0 %535 }
 0x623   :  { %v540_v2 = vsub.f32 %v532_v58, %v536_v1 }
 0x624   :  { %v539_v3 = vpop.xlane.xlu1 %538 }
 0x625   :  { %v542_v4 = vmul.f32 1.442695, %v540_v2  ;;  %v541_v5 = vsub.f32 %v533_v63, %v539_v3 }
 0x627   :  { %3552 = vpow2.f32 %v542_v4  ;;  %v544_v6 = vmul.f32 1.442695, %v541_v5 }
 0x628   :  { %v607_v7 = vpop.permute.xlu1 %606 }
 0x629   :  { %3554 = vpow2.f32 %v544_v6  ;;  %v612_v8 = vsel %vm338_vm3, %v607_v7, 0 }
 0x62a   :  { %3238 = vmatpush3.bf16.msra.mxu0 %v612_v8 }
 0x62b   :  { %3249 = vmatprep.subr.bf16.mxu0 %v3682_v15 }
 0x62c   :  { %v657_v19 = vpop.permute.xlu1 %656 }
 0x62d   :  { %v662_v25 = vsel %vm197_vm2, %v657_v19, 0 }
 0x630   :  { %v707_v24 = vpop.permute.xlu1 %706 }
 0x631   :  { %v3553_v9 = vpop.eup %3552  ;;  %v712_v27 = vsel %vm197_vm2, %v707_v24, 0 }
 0x632   :  { %v546_v10 = vsel %vm197_vm2, %v3553_v9, 0.0 }
 0x633   :  { %v3555_v11 = vpop.eup %3554  ;;  %547 = vadd.xlane.f32.xlu0 %v546_v10 }
 0x634   :  { %v549_v12 = vsel %vm197_vm2, %v3555_v11, 0.0  ;;  %v705_v29 = vpop.permute.xlu1 %704 }
 0x637   :  { %550 = vadd.xlane.f32.xlu0 %v549_v12 }
 0x64d   :  { %558 = vrot.lane.b32.xlu0 %v3853_v39, %s3688_s24 }
 0x651   :  { %654 = vrot.lane.b32.xlu0 %v3853_v39, %s4470_s25 }
 0x6c0   :  { %v548_v13 = vpop.xlane.xlu0 %547 }
 0x6c1   :  { %3556 = vrcp.f32 %v548_v13 }
 0x6c4   :  { %v551_v14 = vpop.xlane.xlu0 %550 }
 0x6c5   :  { %3558 = vrcp.f32 %v551_v14 }
 0x6c8   :  { %v559_v16 = vpop.permute.xlu0 %558 }
 0x6c9   :  { %v564_v17 = vsel %vm338_vm3, %v559_v16, 0 }
 0x6ca   :  { %3232 = vmatpush3.bf16.msra.mxu1 %v564_v17 }
 0x6cb   :  { %v3557_v18 = vpop.eup %3556  ;;  %3243 = vmatprep.subr.bf16.mxu1 %v3682_v15 }
 0x6cc   :  { %v554_v20 = vmul.f32 %v3557_v18, %v3553_v9  ;;  %v655_v28 = vpop.permute.xlu0 %654 }
 0x6ce   :  { %v556_v21 = vpack.c.bf16 %v554_v20, %v554_v20 }
 0x6cf   :  { %v3559_v22 = vpop.eup %3558 }
 0x6d0   :  { %v555_v23 = vmul.f32 %v3559_v22, %v3555_v11  ;;  %3234 = vmatmul.mubr.msk.bf16.vlgmr.msra.gmra.mrb[12].mxu1 %vm197_vm2, %v556_v21 }
 0x6d1   :  { %3245 = vmatprep.mubr.msk.bf16.mxu1 %vm3683_vm1, %v3682_v15 }
 0x6d2   :  { %v557_v26 = vpack.c.bf16 %v555_v23, %v555_v23 }
 0x6d3   :  { %3244 = vmatpush3.bf16.xpose.msra.mxu1 %v662_v25 }
 0x6d4   :  { %3240 = vmatmul.mubr.msk.bf16.vlgmr.msra.gmra.mrb[16].mxu0 %vm197_vm2, %v557_v26  ;;  %3255 = vmatprep.subr.bf16.mxu1 %v3682_v15 }
 0x6d5   :  { %3250 = vmatpush3.bf16.xpose.msra.mxu0 %v712_v27  ;;  %3251 = vmatprep.mubr.msk.bf16.mxu0 %vm3683_vm1, %v3682_v15 }
 0x6d6   :  { %3261 = vmatprep.subr.bf16.mxu0 %v3682_v15 }
 0x6da   :  { %3246 = vmatmul.mubr.msk.bf16.vlgmr.msra.gmra.mrb[16].mxu1 %vm197_vm2, %v655_v28 }
 0x6db   :  { %3257 = vmatprep.mubr.msk.bf16.mxu1 %vm3683_vm1, %v3682_v15 }
 0x6dc   :  { %3252 = vmatmul.mubr.msk.bf16.vlgmr.msra.gmra.mrb[20].mxu0 %vm197_vm2, %v705_v29 }
 0x6dd   :  { %3263 = vmatprep.mubr.msk.bf16.mxu0 %vm3683_vm1, %v3682_v15 }
 0x7a3   :  { %v3963_v30 = vpop.f32.mrb[12].mxu1 }
 0x7a4   :  { %v3235_v33 = vpop.f32.mrb[13].mxu1 }
 0x7a5   :  { %v603_v34 = vpop.f32.mrb[14].mxu1 }
 0x7a6   :  { %v3236_v35 = vpop.f32.mrb[15].mxu1 }
 0x7a7   :  { %v3965_v36 = vpop.f32.mrb[16].mxu0 }
 0x7a8   :  { %v3486_v37 = vpack.i.bf16 %v3965_v36, %v3963_v30  ;;  %v3241_v38 = vpop.f32.mrb[17].mxu0 }
 0x7a9   :  { %v651_v41 = vpop.f32.mrb[18].mxu0 }
 0x7aa   :  { %v3242_v43 = vpop.f32.mrb[19].mxu0 }
 0x7ad   :  { %v698_v45 = vpop.f32.mrb[16].mxu1 }
 0x7ae   :  { %v754_v46 = vmul.f32 0.35355338, %v698_v45  ;;  %v3247_v47 = vpop.f32.mrb[17].mxu1 }
 0x7af   :  { %v701_v48 = vpop.f32.mrb[18].mxu1  ;;  %v748_v49 = vpop.f32.mrb[20].mxu0 }
 0x7b0   :  { %v755_v50 = vmul.f32 0.35355338, %v748_v49  ;;  %v3248_v51 = vpop.f32.mrb[19].mxu1  ;;  %v3253_v52 = vpop.f32.mrb[21].mxu0  ;;  %v756_v53 = vadd.f32 %v754_v46, %v3879_v56 }
 0x7b1   :  { %v751_v54 = vpop.f32.mrb[22].mxu0 }
 0x7b2   :  { %v3254_v55 = vpop.f32.mrb[23].mxu0  ;;  %v758_v57 = vsel %vm197_vm2, %v756_v53, -inf  ;;  %v757_v58 = vadd.f32 %v755_v50, %v3881_v60 }
 0x7b3   :  { %759 = vmax.xlane.f32.xlu0 %v758_v57 }
 0x7b4   :  { %v761_v59 = vsel %vm197_vm2, %v757_v58, -inf }
 0x7b5   :  { %762 = vmax.xlane.f32.xlu1 %v761_v59 }
 0x7c6   :  { %830 = vrot.lane.b32.xlu1 %v3855_v42, %s4468_s26 }
 0x7ca   :  { %880 = vrot.lane.b32.xlu1 %v3853_v39, %s4466_s28 }
 0x7ce   :  { %930 = vrot.lane.b32.xlu1 %v3855_v42, %s4466_s28 }
 0x7d2   :  { %928 = vrot.lane.b32.xlu1 %v3855_v42, %s4463_s29 }
 0x840   :  { %v760_v61 = vpop.xlane.xlu0 %759 }
 0x841   :  { %v764_v62 = vsub.f32 %v756_v53, %v760_v61 }
 0x842   :  { %v763_v63 = vpop.xlane.xlu1 %762 }
 0x843   :  { %v766_v0 = vmul.f32 1.442695, %v764_v62  ;;  %v765_v1 = vsub.f32 %v757_v58, %v763_v63 }
 0x845   :  { %3560 = vpow2.f32 %v766_v0  ;;  %v768_v2 = vmul.f32 1.442695, %v765_v1 }
 0x846   :  { %v831_v3 = vpop.permute.xlu1 %830 }
 0x847   :  { %3562 = vpow2.f32 %v768_v2  ;;  %v836_v4 = vsel %vm338_vm3, %v831_v3, 0 }
 0x848   :  { %3262 = vmatpush3.bf16.msra.mxu0 %v836_v4 }
 0x849   :  { %3273 = vmatprep.subr.bf16.mxu0 %v3682_v15 }
 0x84a   :  { %v881_v14 = vpop.permute.xlu1 %880 }
 0x84b   :  { %v886_v21 = vsel %vm197_vm2, %v881_v14, 0  ;;  %v3519_v14 = vld [vmem:[%s4438_s6 + $0x8] sm:$0xff]  }
 0x84e   :  { %v931_v20 = vpop.permute.xlu1 %930 }
 0x84f   :  { %v3561_v5 = vpop.eup %3560  ;;  %v936_v23 = vsel %vm197_vm2, %v931_v20, 0 }
 0x850   :  { %v770_v6 = vsel %vm197_vm2, %v3561_v5, 0.0 }
 0x851   :  { %v3563_v7 = vpop.eup %3562  ;;  %771 = vadd.xlane.f32.xlu0 %v770_v6 }
 0x852   :  { %v773_v8 = vsel %vm197_vm2, %v3563_v7, 0.0  ;;  %v929_v25 = vpop.permute.xlu1 %928 }
 0x855   :  { %774 = vadd.xlane.f32.xlu0 %v773_v8 }
 0x86b   :  { %782 = vrot.lane.b32.xlu0 %v3853_v39, %s4468_s26 }
 0x86f   :  { %878 = vrot.lane.b32.xlu0 %v3853_v39, %s4463_s29 }
 0x8de   :  { %v772_v9 = vpop.xlane.xlu0 %771 }
 0x8df   :  { %3564 = vrcp.f32 %v772_v9 }
 0x8e2   :  { %v775_v10 = vpop.xlane.xlu0 %774 }
 0x8e3   :  { %3566 = vrcp.f32 %v775_v10 }
 0x8e6   :  { %v783_v11 = vpop.permute.xlu0 %782 }
 0x8e7   :  { %v788_v12 = vsel %vm338_vm3, %v783_v11, 0 }
 0x8e8   :  { %3256 = vmatpush3.bf16.msra.mxu1 %v788_v12 }
 0x8e9   :  { %v3565_v13 = vpop.eup %3564  ;;  %3267 = vmatprep.subr.bf16.mxu1 %v3682_v15 }
 0x8ea   :  { %v778_v16 = vmul.f32 %v3565_v13, %v3561_v5  ;;  %v879_v24 = vpop.permute.xlu0 %878  ;;  %v3518_v13 = vld [vmem:[%s4438_s6] sm:$0xff]  }
 0x8ec   :  { %v780_v17 = vpack.c.bf16 %v778_v16, %v778_v16 }
 0x8ed   :  { %v3567_v18 = vpop.eup %3566 }
 0x8ee   :  { %v779_v19 = vmul.f32 %v3567_v18, %v3563_v7  ;;  %3258 = vmatmul.mubr.msk.bf16.vlgmr.msra.gmra.mrb[20].mxu1 %vm197_vm2, %v780_v17 }
 0x8ef   :  { %3269 = vmatprep.mubr.msk.bf16.mxu1 %vm3683_vm1, %v3682_v15 }
 0x8f0   :  { %v781_v22 = vpack.c.bf16 %v779_v19, %v779_v19 }
 0x8f1   :  { %3268 = vmatpush3.bf16.xpose.msra.mxu1 %v886_v21 }
 0x8f2   :  { %3264 = vmatmul.mubr.msk.bf16.vlgmr.msra.gmra.mrb[24].mxu0 %vm197_vm2, %v781_v22  ;;  %3279 = vmatprep.subr.bf16.mxu1 %v3682_v15 }
 0x8f3   :  { %3274 = vmatpush3.bf16.xpose.msra.mxu0 %v936_v23  ;;  %3275 = vmatprep.mubr.msk.bf16.mxu0 %vm3683_vm1, %v3682_v15 }
 0x8f4   :  { %3285 = vmatprep.subr.bf16.mxu0 %v3682_v15 }
 0x8f8   :  { %3270 = vmatmul.mubr.msk.bf16.vlgmr.msra.gmra.mrb[24].mxu1 %vm197_vm2, %v879_v24 }
 0x8f9   :  { %3281 = vmatprep.mubr.msk.bf16.mxu1 %vm3683_vm1, %v3682_v15 }
 0x8fa   :  { %3276 = vmatmul.mubr.msk.bf16.vlgmr.msra.gmra.mrb[28].mxu0 %vm197_vm2, %v929_v25 }
 0x8fb   :  { %3287 = vmatprep.mubr.msk.bf16.mxu0 %vm3683_vm1, %v3682_v15 }
 0x9c1   :  { %v824_v26 = vpop.f32.mrb[20].mxu1 }
 0x9c2   :  { %v3259_v27 = vpop.f32.mrb[21].mxu1 }
 0x9c3   :  { %v827_v28 = vpop.f32.mrb[22].mxu1 }
 0x9c4   :  { %v3260_v29 = vpop.f32.mrb[23].mxu1 }
 0x9c5   :  { %v872_v33 = vpop.f32.mrb[24].mxu0 }
 0x9c6   :  { %v3491_v34 = vpack.i.bf16 %v872_v33, %v824_v26  ;;  %v3265_v35 = vpop.f32.mrb[25].mxu0 }
 0x9c7   :  { %v875_v38 = vpop.f32.mrb[26].mxu0 }
 0x9c8   :  { %v3266_v41 = vpop.f32.mrb[27].mxu0 }
 0x9cb   :  { %v922_v43 = vpop.f32.mrb[24].mxu1 }
 0x9cc   :  { %v978_v45 = vmul.f32 0.35355338, %v922_v43  ;;  %v3271_v46 = vpop.f32.mrb[25].mxu1 }
 0x9cd   :  { %v925_v47 = vpop.f32.mrb[26].mxu1  ;;  %v972_v48 = vpop.f32.mrb[28].mxu0 }
 0x9ce   :  { %v979_v49 = vmul.f32 0.35355338, %v972_v48  ;;  %v3272_v50 = vpop.f32.mrb[27].mxu1  ;;  %v3277_v51 = vpop.f32.mrb[29].mxu0  ;;  %v980_v52 = vadd.f32 %v978_v45, %v3879_v56 }
 0x9cf   :  { %v975_v53 = vpop.f32.mrb[30].mxu0 }
 0x9d0   :  { %v3278_v54 = vpop.f32.mrb[31].mxu0  ;;  %v982_v55 = vsel %vm197_vm2, %v980_v52, -inf  ;;  %v981_v57 = vadd.f32 %v979_v49, %v3881_v60 }
 0x9d1   :  { %983 = vmax.xlane.f32.xlu0 %v982_v55 }
 0x9d2   :  { %v985_v58 = vsel %vm197_vm2, %v981_v57, -inf }
 0x9d3   :  { %986 = vmax.xlane.f32.xlu1 %v985_v58 }
 0x9e4   :  { %1054 = vrot.lane.b32.xlu1 %v3855_v42, %s4461_s4 }
 0x9e8   :  { %3487 = vrot.lane.b32.xlu1 %v3486_v37, %s4459_s30  ;;  %s4465_s30 = smov 24  }
 0x9ec   :  { %3492 = vrot.lane.b32.xlu1 %v3491_v34, %s4458_s5 }
 0xa5e   :  { %v984_v59 = vpop.xlane.xlu0 %983 }
 0xa5f   :  { %v988_v61 = vsub.f32 %v980_v52, %v984_v59 }
 0xa60   :  { %v987_v62 = vpop.xlane.xlu1 %986 }
 0xa61   :  { %v990_v63 = vmul.f32 1.442695, %v988_v61  ;;  %v989_v0 = vsub.f32 %v981_v57, %v987_v62 }
 0xa63   :  { %3568 = vpow2.f32 %v990_v63  ;;  %v992_v1 = vmul.f32 1.442695, %v989_v0 }
 0xa64   :  { %v1055_v2 = vpop.permute.xlu1 %1054 }
 0xa65   :  { %3570 = vpow2.f32 %v992_v1  ;;  %v1060_v42 = vsel %vm338_vm3, %v1055_v2, 0 }
 0xa66   :  { %3286 = vmatpush3.bf16.msra.mxu0 %v1060_v42 }
 0xa67   :  { %3299 = vmatprep.subr.bf16.mxu0 %v3682_v15 }
 0xa68   :  { %v3488_v25 = vpop.permute.xlu1 %3487 }
 0xa69   :  { %v3490_v27 = vunpack.i.h.bf16 %v3488_v25  ;;  %v3489_v28 = vunpack.i.l.bf16 %v3488_v25 }
 0xa6b   :  { %v1127_v35 = vsel %vm197_vm2, %v3923_v44, %v3490_v27  ;;  %v1126_v38 = vsel %vm197_vm2, %v3921_v40, %v3489_v28  ;;  %v2997_v40 = vld [vmem:[%s4439_s7] ss:$0 sm:$0xff] }
 0xa6c   :  { %v3493_v26 = vpop.permute.xlu1 %3492 }
 0xa6d   :  { %v3569_v3 = vpop.eup %3568  ;;  %v3495_v29 = vunpack.i.h.bf16 %v3493_v26  ;;  %v3494_v33 = vunpack.i.l.bf16 %v3493_v26 }
 0xa6e   :  { %v994_v30 = vsel %vm197_vm2, %v3569_v3, 0.0 }
 0xa6f   :  { %v3571_v36 = vpop.eup %3570  ;;  %995 = vadd.xlane.f32.xlu0 %v994_v30  ;;  %v1129_v45 = vsel %vm1128_vm4, %v1126_v38, %v3494_v33  ;;  %v1130_v46 = vsel %vm1128_vm4, %v1127_v35, %v3495_v29 }
 0xa70   :  { %v997_v37 = vsel %vm197_vm2, %v3571_v36, 0.0 }
 0xa73   :  { %998 = vadd.xlane.f32.xlu0 %v997_v37 }
 0xa89   :  { %1006 = vrot.lane.b32.xlu0 %v3853_v39, %s4461_s4 }
 0xafc   :  { %v996_v4 = vpop.xlane.xlu0 %995 }
 0xafd   :  { %3572 = vrcp.f32 %v996_v4 }
 0xb00   :  { %v999_v5 = vpop.xlane.xlu0 %998 }
 0xb01   :  { %3574 = vrcp.f32 %v999_v5 }
 0xb04   :  { %v1007_v6 = vpop.permute.xlu0 %1006 }
 0xb05   :  { %v1012_v7 = vsel %vm338_vm3, %v1007_v6, 0 }
 0xb06   :  { %3280 = vmatpush3.bf16.msra.mxu1 %v1012_v7 }
 0xb07   :  { %v3573_v8 = vpop.eup %3572  ;;  %3291 = vmatprep.subr.bf16.mxu1 %v3682_v15 }
 0xb08   :  { %v1002_v9 = vmul.f32 %v3573_v8, %v3569_v3 }
 0xb0a   :  { %v1004_v10 = vpack.c.bf16 %v1002_v9, %v1002_v9 }
 0xb0b   :  { %v3575_v11 = vpop.eup %3574 }
 0xb0c   :  { %v1003_v12 = vmul.f32 %v3575_v11, %v3571_v36  ;;  %3282 = vmatmul.mubr.msk.bf16.vlgmr.msra.gmra.mrb[28].mxu1 %vm197_vm2, %v1004_v10  ;;  %v3521_v36 = vld [vmem:[%s4442_s10 + $0x8] sm:$0xff]   ;;  %v3001_v11 = vld [vmem:[%s4440_s8] ss:$0 sm:$0xff] }
 0xb0d   :  { %3295 = vmatprep.mubr.msk.bf16.mxu1 %vm3683_vm1, %v3682_v15  ;;  %3292 = vmatpush3.bf16.msra.mxu1 %v3518_v13 }
 0xb0e   :  { %v1005_v39 = vpack.c.bf16 %v1003_v12, %v1003_v12  ;;  %3293 = vmatprep.subr.bf16.mxu1 %v3682_v15 }
 0xb10   :  { %3288 = vmatmul.mubr.msk.bf16.vlgmr.msra.gmra.mrb[32].mxu0 %vm197_vm2, %v1005_v39 }
 0xb11   :  { %3303 = vmatprep.mubr.msk.bf16.mxu0 %vm3683_vm1, %v3682_v15  ;;  %3294 = vmatpush3.bf16.msra.mxu1 %v3519_v14  ;;  %v3002_v14 = vld [vmem:[%s4441_s9] ss:$0 sm:$0xff] }
 0xb12   :  { %3307 = vmatprep.subr.bf16.mxu1 %v3682_v15 }
 0xbdf   :  { %v1048_v16 = vpop.f32.mrb[28].mxu1 }
 0xbe0   :  { %v3283_v17 = vpop.f32.mrb[29].mxu1 }
 0xbe1   :  { %v1051_v18 = vpop.f32.mrb[30].mxu1 }
 0xbe2   :  { %v3284_v19 = vpop.f32.mrb[31].mxu1 }
 0xbe3   :  { %v1096_v20 = vpop.f32.mrb[32].mxu0 }
 0xbe4   :  { %v3496_v21 = vpack.i.bf16 %v1096_v20, %v1048_v16  ;;  %v3289_v22 = vpop.f32.mrb[33].mxu0  ;;  %v3522_v20 = vld [vmem:[%s4444_s12] sm:$0xff]  }
 0xbe5   :  { %v1099_v23 = vpop.f32.mrb[34].mxu0  ;;  %v3524_v22 = vld [vmem:[%s4444_s12 + $0x10] sm:$0xff]  }
 0xbe6   :  { %3497 = vrot.lane.b32.xlu0 %v3496_v21, %s4465_s30  ;;  %v3290_v24 = vpop.f32.mrb[35].mxu0  ;;  %v3523_v21 = vld [vmem:[%s4444_s12 + $0x8] sm:$0xff]   ;;  %v3525_v23 = vld [vmem:[%s4444_s12 + $0x18] sm:$0xff]  }
 0xbe7   :  { %v3003_v24 = vld [vmem:[%s4443_s11] ss:$0 sm:$0xff] }
 0xc58   :  { %v3498_v34 = vpop.permute.xlu0 %3497 }
 0xc59   :  { %v3500_v41 = vunpack.i.h.bf16 %v3498_v34  ;;  %v3499_v43 = vunpack.i.l.bf16 %v3498_v34 }
 0xc5b   :  { %v1133_v47 = vsel %vm1131_vm5, %v1130_v46, %v3500_v41  ;;  %v1132_v48 = vsel %vm1131_vm5, %v1129_v45, %v3499_v43 }
 0xc5c   :  { %v1138_v49 = vpack.c.bf16 %v1133_v47, %v1132_v48 }
 0xc5e   :  { %3296 = vmatmul.mubr.msk.bf16.vlgmr.msra.gmra.mrb[32].mxu1 %vm74_vm0, %v1138_v49 }
 0xc5f   :  { %3315 = vmatprep.mubr.msk.bf16.mxu1 %vm3683_vm1, %v3682_v15  ;;  %3308 = vmatpush3.bf16.msra.mxu1 %v3522_v20 }
 0xc60   :  { %3309 = vmatprep.subr.bf16.mxu1 %v3682_v15 }
 0xc63   :  { %3310 = vmatpush3.bf16.msra.mxu1 %v3523_v21 }
 0xc64   :  { %3311 = vmatprep.subr.bf16.mxu1 %v3682_v15 }
 0xc67   :  { %3312 = vmatpush3.bf16.msra.mxu1 %v3524_v22 }
 0xc68   :  { %3313 = vmatprep.subr.bf16.mxu1 %v3682_v15 }
 0xc6b   :  { %3314 = vmatpush3.bf16.msra.mxu1 %v3525_v23 }
 0xc6c   :  { %3333 = vmatprep.subr.bf16.mxu1 %v3682_v15 }
 0xd31   :  { %v1195_v44 = vpop.f32.mrb[32].mxu1 }
 0xd32   :  { %v1196_v50 = vadd.f32 %v2997_v40, %v1195_v44  ;;  %v3297_v51 = vpop.f32.mrb[33].mxu1 }
 0xd33   :  { %v1198_v52 = vpop.f32.mrb[34].mxu1 }
 0xd34   :  { %v1199_v53 = vadd.f32 %v2997_v40, %v1198_v52  ;;  %v3298_v54 = vpop.f32.mrb[35].mxu1  ;;  %v1202_v55 = vadd.f32 %v1196_v50, %v3841_v31 }
 0xd36   :  { %v1206_v57 = vsel %vm74_vm0, %v1202_v55, 0.0  ;;  %v1203_v58 = vadd.f32 %v1199_v53, %v3843_v32  ;;  %v3520_v32 = vld [vmem:[%s4442_s10] sm:$0xff]  }
 0xd37   :  { %1207 = vadd.xlane.f32.xlu1 %v1206_v57  ;;  %3300 = vmatpush3.bf16.msra.mxu0 %v3520_v32 }
 0xd38   :  { %v1209_v59 = vsel %vm74_vm0, %v1203_v58, 0.0  ;;  %3301 = vmatprep.subr.bf16.mxu0 %v3682_v15 }
 0xd39   :  { %1210 = vadd.xlane.f32.xlu0 %v1209_v59 }
 0xd3b   :  { %3302 = vmatpush3.bf16.msra.mxu0 %v3521_v36 }
 0xd3c   :  { %3319 = vmatprep.subr.bf16.mxu0 %v3682_v15 }
 0xdc4   :  { %v1208_v61 = vpop.xlane.xlu1 %1207 }
 0xdc5   :  { %v1212_v62 = vmul.f32 0.03125, %v1208_v61 }
 0xdc6   :  { %v1211_v63 = vpop.xlane.xlu0 %1210 }
 0xdc7   :  { %v1214_v0 = vsub.f32 %v1202_v55, %v1212_v62  ;;  %v1213_v1 = vmul.f32 0.03125, %v1211_v63 }
 0xdc9   :  { %v1215_v2 = vsub.f32 %v1203_v58, %v1213_v1  ;;  %v1216_v42 = vmul.f32 %v1214_v0, %v1214_v0  ;;  %v3007_v58 = vld [vmem:[%s4445_s13] ss:$0 sm:$0xff] }
 0xdcb   :  { %v1218_v3 = vsel %vm74_vm0, %v1216_v42, 0.0  ;;  %v1217_v30 = vmul.f32 %v1215_v2, %v1215_v2 }
 0xdcc   :  { %1219 = vadd.xlane.f32.xlu0 %v1218_v3 }
 0xdcd   :  { %v1221_v31 = vsel %vm74_vm0, %v1217_v30, 0.0 }
 0xdd0   :  { %1222 = vadd.xlane.f32.xlu0 %v1221_v31 }
 0xe59   :  { %v1220_v37 = vpop.xlane.xlu0 %1219 }
 0xe5a   :  { %v1224_v4 = vmul.f32 0.03125, %v1220_v37 }
 0xe5c   :  { %v1226_v5 = vadd.f32 1e-12, %v1224_v4 }
 0xe5d   :  { %v1223_v6 = vpop.xlane.xlu0 %1222 }
 0xe5e   :  { %3576 = vrsqrt.f32 %v1226_v5  ;;  %v1225_v7 = vmul.f32 0.03125, %v1223_v6 }
 0xe60   :  { %v1227_v8 = vadd.f32 1e-12, %v1225_v7 }
 0xe62   :  { %3578 = vrsqrt.f32 %v1227_v8 }
 0xe68   :  { %v3577_v9 = vpop.eup %3576 }
 0xe69   :  { %v1230_v10 = vmul.f32 %v3577_v9, %v1214_v0 }
 0xe6b   :  { %v1238_v39 = vmul.f32 %v3001_v11, %v1230_v10  ;;  %v3526_v10 = vld [vmem:[%s4479_s0 + $0x10] sm:$0xff]  }
 0xe6c   :  { %v3579_v12 = vpop.eup %3578 }
 0xe6d   :  { %v1231_v13 = vmul.f32 %v3579_v12, %v1215_v2  ;;  %v1246_v17 = vadd.f32 %v3002_v14, %v1238_v39 }
 0xe6f   :  { %v1239_v16 = vmul.f32 %v3001_v11, %v1231_v13  ;;  %v3527_v11 = vld [vmem:[%s4479_s0 + $0x18] sm:$0xff]   ;;  %s4491_s0 = smov 24  }
 0xe71   :  { %v1247_v18 = vadd.f32 %v3002_v14, %v1239_v16 }
 0xe73   :  { %v1252_v19 = vpack.c.bf16 %v1247_v18, %v1246_v17 }
 0xe75   :  { %3304 = vmatmul.mubr.msk.bf16.vlgmr.msra.gmra.mrb[36].mxu0 %vm74_vm0, %v1252_v19  ;;  %v3013_v19 = vld [vmem:[%s4446_s14] ss:$0 sm:$0xff] }
 0xe76   :  { %3323 = vmatprep.mubr.msk.bf16.mxu0 %vm3683_vm1, %v3682_v15  ;;  %3320 = vmatpush3.bf16.msra.mxu0 %v3526_v10 }
 0xe77   :  { %3321 = vmatprep.subr.bf16.mxu0 %v3682_v15 }
 0xe7a   :  { %3322 = vmatpush3.bf16.msra.mxu0 %v3527_v11 }
 0xe7b   :  { %3327 = vmatprep.subr.bf16.mxu0 %v3682_v15 }
 0xf48   :  { %v1309_v25 = vpop.f32.mrb[36].mxu0 }
 0xf49   :  { %v1310_v26 = vadd.f32 %v3003_v24, %v1309_v25  ;;  %v3305_v27 = vpop.f32.mrb[37].mxu0 }
 0xf4a   :  { %v1312_v28 = vpop.f32.mrb[38].mxu0 }
 0xf4b   :  { %v1316_v29 = vmul.f32 %v1310_v26, %v1310_v26  ;;  %v1313_v33 = vadd.f32 %v3003_v24, %v1312_v28  ;;  %v3306_v34 = vpop.f32.mrb[39].mxu0  ;;  %v3014_v24 = vld [vmem:[%s4447_s15] ss:$0 sm:$0xff] }
 0xf4d   :  { %v1318_v35 = vmul.f32 %v1316_v29, %v1310_v26  ;;  %v1317_v38 = vmul.f32 %v1313_v33, %v1313_v33  ;;  %v3020_v29 = vld [vmem:[%s4482_s27 + $0x1] ss:$0 sm:$0xff]  ;;  %s4484_s27 = smov 112  }
 0xf4f   :  { %v1320_v41 = vmul.f32 0.044715, %v1318_v35  ;;  %v1319_v43 = vmul.f32 %v1317_v38, %v1313_v33 }
 0xf51   :  { %v1322_v45 = vadd.f32 %v1320_v41, %v1310_v26  ;;  %v1321_v46 = vmul.f32 0.044715, %v1319_v43 }
 0xf53   :  { %v1324_v47 = vmul.f32 0.7978846, %v1322_v45  ;;  %v1323_v48 = vadd.f32 %v1321_v46, %v1313_v33 }
 0xf55   :  { %3580 = vtanh.f32 %v1324_v47  ;;  %v1325_v49 = vmul.f32 0.7978846, %v1323_v48 }
 0xf57   :  { %3582 = vtanh.f32 %v1325_v49 }
 0xf5f   :  { %v3581_v40 = vpop.eup %3580 }
 0xf60   :  { %v1328_v44 = vadd.f32 1.0, %v3581_v40 }
 0xf61   :  { %v3583_v50 = vpop.eup %3582 }
 0xf62   :  { %v1330_v51 = vmul.f32 0.5, %v1328_v44  ;;  %v1329_v52 = vadd.f32 1.0, %v3583_v50 }
 0xf64   :  { %v1331_v53 = vmul.f32 0.5, %v1329_v52  ;;  %v1332_v54 = vmul.f32 %v1330_v51, %v1310_v26 }
 0xf66   :  { %v1333_v55 = vmul.f32 %v1331_v53, %v1313_v33 }
 0xf68   :  { %v1342_v57 = vpack.c.bf16 %v1333_v55, %v1332_v54 }
 0xf6a   :  { %3316 = vmatmul.mubr.msk.bf16.vlgmr.msra.gmra.mrb[36].mxu1 %vm1374_vm6, %v1342_v57 }
 0xf6b   :  { %3335 = vmatprep.mubr.msk.bf16.mxu1 %vm3683_vm1, %v3682_v15 }
0x103d   :  { %v1412_v59 = vpop.f32.mrb[36].mxu1 }
0x103e   :  { %v1413_v61 = vadd.f32 %v3007_v58, %v1412_v59  ;;  %v3317_v62 = vpop.f32.mrb[37].mxu1 }
0x103f   :  { %v1415_v63 = vpop.f32.mrb[38].mxu1 }
0x1040   :  { %v1416_v0 = vadd.f32 %v3007_v58, %v1415_v63  ;;  %v3318_v1 = vpop.f32.mrb[39].mxu1  ;;  %v1419_v2 = vadd.f32 %v1413_v61, %v1246_v17 }
0x1042   :  { %v1423_v42 = vsel %vm74_vm0, %v1419_v2, 0.0  ;;  %v1420_v3 = vadd.f32 %v1416_v0, %v1247_v18 }
0x1043   :  { %1424 = vadd.xlane.f32.xlu1 %v1423_v42 }
0x1044   :  { %v1426_v30 = vsel %vm74_vm0, %v1420_v3, 0.0 }
0x1045   :  { %1427 = vadd.xlane.f32.xlu0 %v1426_v30 }
0x10d0   :  { %v1425_v31 = vpop.xlane.xlu1 %1424 }
0x10d1   :  { %v1429_v32 = vmul.f32 0.03125, %v1425_v31 }
0x10d2   :  { %v1428_v36 = vpop.xlane.xlu0 %1427 }
0x10d3   :  { %v1431_v37 = vsub.f32 %v1419_v2, %v1429_v32  ;;  %v1430_v4 = vmul.f32 0.03125, %v1428_v36 }
0x10d5   :  { %v1432_v5 = vsub.f32 %v1420_v3, %v1430_v4  ;;  %v1433_v6 = vmul.f32 %v1431_v37, %v1431_v37 }
0x10d7   :  { %v1435_v7 = vsel %vm74_vm0, %v1433_v6, 0.0  ;;  %v1434_v8 = vmul.f32 %v1432_v5, %v1432_v5 }
0x10d8   :  { %1436 = vadd.xlane.f32.xlu1 %v1435_v7 }
0x10d9   :  { %v1438_v9 = vsel %vm74_vm0, %v1434_v8, 0.0 }
0x10da   :  { %1439 = vadd.xlane.f32.xlu0 %v1438_v9 }
0x1165   :  { %v1437_v12 = vpop.xlane.xlu1 %1436 }
0x1166   :  { %v1441_v39 = vmul.f32 0.03125, %v1437_v12 }
0x1167   :  { %v1440_v13 = vpop.xlane.xlu0 %1439 }
0x1168   :  { %v1443_v14 = vadd.f32 1e-12, %v1441_v39  ;;  %v1442_v16 = vmul.f32 0.03125, %v1440_v13 }
0x116a   :  { %3584 = vrsqrt.f32 %v1443_v14  ;;  %v1444_v17 = vadd.f32 1e-12, %v1442_v16 }
0x116c   :  { %3586 = vrsqrt.f32 %v1444_v17 }
0x1174   :  { %v3585_v18 = vpop.eup %3584 }
0x1175   :  { %v1447_v20 = vmul.f32 %v3585_v18, %v1431_v37 }
0x1176   :  { %v3587_v21 = vpop.eup %3586 }
0x1177   :  { %v1455_v22 = vmul.f32 %v3013_v19, %v1447_v20  ;;  %v1448_v23 = vmul.f32 %v3587_v21, %v1432_v5 }
0x1179   :  { %v1456_v25 = vmul.f32 %v3013_v19, %v1448_v23  ;;  %v4121_v26 = vadd.f32 %v3014_v24, %v1455_v22 }
0x117b   :  { %v4123_v27 = vadd.f32 %v3014_v24, %v1456_v25 }
0x117d   :  { %v1470_v28 = vpack.c.bf16 %v4123_v27, %v4121_v26 }
0x117f   :  { %3324 = vmatmul.mubr.msk.bf16.vlgmr.msra.gmra.mrb[40].mxu0 %vm74_vm0, %v1470_v28 }
0x1180   :  { %3329 = vmatprep.mubr.msk.bf16.mxu0 %vm3683_vm1, %v3682_v15 }
0x1252   :  { %v1528_v33 = vpop.f32.mrb[40].mxu0 }
0x1253   :  { %v1529_v34 = vadd.f32 %v3020_v29, %v1528_v33  ;;  %v3325_v35 = vpop.f32.mrb[41].mxu0 }
0x1254   :  { %v1531_v38 = vpop.f32.mrb[42].mxu0 }
0x1255   :  { %v4133_v41 = vpack.c.bf16 %v1529_v34, %v1529_v34  ;;  %v1532_v43 = vadd.f32 %v3020_v29, %v1531_v38  ;;  %v3326_v45 = vpop.f32.mrb[43].mxu0 }
0x1257   :  { %v4135_v46 = vpack.c.bf16 %v1532_v43, %v1532_v43  ;;  %1538 = vrot.lane.b32.xlu1 %v4133_v41, %s3684_s3 }
0x1259   :  { %1587 = vrot.lane.b32.xlu0 %v4135_v46, %s3684_s3  ;;  %s4485_s3 = smov 48  }
0x12c9   :  { %v1539_v47 = vpop.permute.xlu1 %1538 }
0x12ca   :  { %v1544_v48 = vsel %vm197_vm2, %v1539_v47, 0 }
0x12cb   :  { %3328 = vmatpush3.bf16.xpose.msra.mxu0 %v1544_v48  ;;  %v1588_v49 = vpop.permute.xlu0 %1587 }
0x12cc   :  { %v1593_v40 = vsel %vm197_vm2, %v1588_v49, 0  ;;  %3339 = vmatprep.subr.bf16.mxu0 %v3682_v15 }
0x12cd   :  { %3334 = vmatpush3.bf16.xpose.msra.mxu1 %v1593_v40 }
0x12ce   :  { %3345 = vmatprep.subr.bf16.mxu1 %v3682_v15 }
0x12d2   :  { %3330 = vmatmul.mubr.msk.bf16.vlgmr.msra.gmra.mrb[44].mxu0 %vm197_vm2, %v4133_v41 }
0x12d3   :  { %3341 = vmatprep.mubr.msk.bf16.mxu0 %vm3683_vm1, %v3682_v15 }
0x12d4   :  { %3336 = vmatmul.mubr.msk.bf16.vlgmr.msra.gmra.mrb[40].mxu1 %vm197_vm2, %v4135_v46 }
0x12d5   :  { %3347 = vmatprep.mubr.msk.bf16.mxu1 %vm3683_vm1, %v3682_v15 }
0x13a5   :  { %v1580_v44 = vpop.f32.mrb[44].mxu0 }
0x13a6   :  { %v1635_v50 = vmul.f32 0.35355338, %v1580_v44  ;;  %v3331_v51 = vpop.f32.mrb[45].mxu0 }
0x13a7   :  { %v1583_v52 = vpop.f32.mrb[46].mxu0  ;;  %v1629_v53 = vpop.f32.mrb[40].mxu1 }
0x13a8   :  { %v1636_v54 = vmul.f32 0.35355338, %v1629_v53  ;;  %v3332_v55 = vpop.f32.mrb[47].mxu0  ;;  %v3337_v57 = vpop.f32.mrb[41].mxu1  ;;  %v1637_v58 = vadd.f32 %v1635_v50, %v3879_v56 }
0x13a9   :  { %v1632_v59 = vpop.f32.mrb[42].mxu1 }
0x13aa   :  { %v3338_v61 = vpop.f32.mrb[43].mxu1  ;;  %v1639_v62 = vsel %vm197_vm2, %v1637_v58, -inf  ;;  %v1638_v63 = vadd.f32 %v1636_v54, %v3881_v60 }
0x13ab   :  { %1640 = vmax.xlane.f32.xlu1 %v1639_v62 }
0x13ac   :  { %v1642_v0 = vsel %vm197_vm2, %v1638_v63, -inf }
0x13ad   :  { %1643 = vmax.xlane.f32.xlu0 %v1642_v0 }
0x13bc   :  { %1663 = vrot.lane.b32.xlu1 %v4133_v41, %s3685_s22 }
0x1438   :  { %v1641_v1 = vpop.xlane.xlu1 %1640 }
0x1439   :  { %v1645_v2 = vsub.f32 %v1637_v58, %v1641_v1 }
0x143a   :  { %v1644_v42 = vpop.xlane.xlu0 %1643 }
0x143b   :  { %v1647_v3 = vmul.f32 1.442695, %v1645_v2  ;;  %v1646_v30 = vsub.f32 %v1638_v63, %v1644_v42 }
0x143c   :  { %v1664_v31 = vpop.permute.xlu1 %1663 }
0x143d   :  { %3588 = vpow2.f32 %v1647_v3  ;;  %v1649_v32 = vmul.f32 1.442695, %v1646_v30  ;;  %v1669_v36 = vsel %vm338_vm3, %v1664_v31, 0 }
0x143e   :  { %3340 = vmatpush3.bf16.msra.mxu0 %v1669_v36 }
0x143f   :  { %3590 = vpow2.f32 %v1649_v32  ;;  %3351 = vmatprep.subr.bf16.mxu0 %v3682_v15 }
0x1447   :  { %v3589_v37 = vpop.eup %3588 }
0x1448   :  { %v1651_v4 = vsel %vm197_vm2, %v3589_v37, 0.0 }
0x1449   :  { %v3591_v5 = vpop.eup %3590  ;;  %1652 = vadd.xlane.f32.xlu1 %v1651_v4 }
0x144a   :  { %v1654_v6 = vsel %vm197_vm2, %v3591_v5, 0.0 }
0x144b   :  { %1655 = vadd.xlane.f32.xlu0 %v1654_v6 }
0x145a   :  { %1761 = vrot.lane.b32.xlu1 %v4133_v41, %s3686_s23 }
0x145e   :  { %1811 = vrot.lane.b32.xlu1 %v4135_v46, %s3686_s23  ;;  %s4487_s23 = smov 104  }
0x1461   :  { %1711 = vrot.lane.b32.xlu0 %v4135_v46, %s3685_s22  ;;  %s4486_s22 = smov 72  }
0x1462   :  { %1759 = vrot.lane.b32.xlu1 %v4133_v41, %s3687_s1 }
0x1465   :  { %1809 = vrot.lane.b32.xlu0 %v4135_v46, %s3687_s1  ;;  %s4488_s1 = smov 40  }
0x14d6   :  { %v1653_v7 = vpop.xlane.xlu1 %1652 }
0x14d7   :  { %3592 = vrcp.f32 %v1653_v7 }
0x14d8   :  { %v1656_v8 = vpop.xlane.xlu0 %1655 }
0x14d9   :  { %3594 = vrcp.f32 %v1656_v8 }
0x14da   :  { %v1762_v11 = vpop.permute.xlu1 %1761 }
0x14db   :  { %v1767_v18 = vsel %vm197_vm2, %v1762_v11, 0 }
0x14dc   :  { %v1712_v9 = vpop.permute.xlu0 %1711 }
0x14dd   :  { %v1717_v10 = vsel %vm338_vm3, %v1712_v9, 0 }
0x14de   :  { %3346 = vmatpush3.bf16.msra.mxu1 %v1717_v10  ;;  %v1812_v17 = vpop.permute.xlu1 %1811 }
0x14df   :  { %3357 = vmatprep.subr.bf16.mxu1 %v3682_v15  ;;  %v1817_v20 = vsel %vm197_vm2, %v1812_v17, 0 }
0x14e0   :  { %v1810_v22 = vpop.permute.xlu0 %1809 }
0x14e1   :  { %v3593_v12 = vpop.eup %3592 }
0x14e2   :  { %v1659_v39 = vmul.f32 %v3593_v12, %v3589_v37  ;;  %v1760_v21 = vpop.permute.xlu1 %1759 }
0x14e3   :  { %v3595_v13 = vpop.eup %3594 }
0x14e4   :  { %v1660_v14 = vmul.f32 %v3595_v13, %v3591_v5  ;;  %v1661_v16 = vpack.c.bf16 %v1659_v39, %v1659_v39 }
0x14e6   :  { %3342 = vmatmul.mubr.msk.bf16.vlgmr.msra.gmra.mrb[48].mxu0 %vm197_vm2, %v1661_v16  ;;  %v1662_v19 = vpack.c.bf16 %v1660_v14, %v1660_v14 }
0x14e7   :  { %3352 = vmatpush3.bf16.xpose.msra.mxu0 %v1767_v18  ;;  %3353 = vmatprep.mubr.msk.bf16.mxu0 %vm3683_vm1, %v3682_v15 }
0x14e8   :  { %3348 = vmatmul.mubr.msk.bf16.vlgmr.msra.gmra.mrb[44].mxu1 %vm197_vm2, %v1662_v19  ;;  %3363 = vmatprep.subr.bf16.mxu0 %v3682_v15 }
0x14e9   :  { %3358 = vmatpush3.bf16.xpose.msra.mxu1 %v1817_v20  ;;  %3359 = vmatprep.mubr.msk.bf16.mxu1 %vm3683_vm1, %v3682_v15 }
0x14ea   :  { %3369 = vmatprep.subr.bf16.mxu1 %v3682_v15 }
0x14ee   :  { %3354 = vmatmul.mubr.msk.bf16.vlgmr.msra.gmra.mrb[52].mxu0 %vm197_vm2, %v1760_v21 }
0x14ef   :  { %3365 = vmatprep.mubr.msk.bf16.mxu0 %vm3683_vm1, %v3682_v15 }
0x14f0   :  { %3360 = vmatmul.mubr.msk.bf16.vlgmr.msra.gmra.mrb[48].mxu1 %vm197_vm2, %v1810_v22 }
0x14f1   :  { %3371 = vmatprep.mubr.msk.bf16.mxu1 %vm3683_vm1, %v3682_v15 }
0x15b9   :  { %v4191_v23 = vpop.f32.mrb[48].mxu0 }
0x15ba   :  { %v3343_v24 = vpop.f32.mrb[49].mxu0 }
0x15bb   :  { %v1708_v25 = vpop.f32.mrb[50].mxu0  ;;  %v4193_v28 = vpop.f32.mrb[44].mxu1 }
0x15bc   :  { %v3344_v29 = vpop.f32.mrb[51].mxu0  ;;  %v3349_v33 = vpop.f32.mrb[45].mxu1 }
0x15bd   :  { %v1756_v34 = vpop.f32.mrb[46].mxu1 }
0x15be   :  { %v3350_v35 = vpop.f32.mrb[47].mxu1 }
0x15c1   :  { %v1803_v38 = vpop.f32.mrb[52].mxu0 }
0x15c2   :  { %v1859_v43 = vmul.f32 0.35355338, %v1803_v38  ;;  %v3355_v45 = vpop.f32.mrb[53].mxu0 }
0x15c3   :  { %v1806_v47 = vpop.f32.mrb[54].mxu0  ;;  %v1853_v48 = vpop.f32.mrb[48].mxu1 }
0x15c4   :  { %v1860_v49 = vmul.f32 0.35355338, %v1853_v48  ;;  %v3356_v40 = vpop.f32.mrb[55].mxu0  ;;  %v3361_v44 = vpop.f32.mrb[49].mxu1  ;;  %v1861_v50 = vadd.f32 %v1859_v43, %v3879_v56 }
0x15c5   :  { %v1856_v51 = vpop.f32.mrb[50].mxu1 }
0x15c6   :  { %v3362_v52 = vpop.f32.mrb[51].mxu1  ;;  %v1863_v53 = vsel %vm197_vm2, %v1861_v50, -inf  ;;  %v1862_v54 = vadd.f32 %v1860_v49, %v3881_v60 }
0x15c7   :  { %1864 = vmax.xlane.f32.xlu1 %v1863_v53 }
0x15c8   :  { %v1866_v55 = vsel %vm197_vm2, %v1862_v54, -inf }
0x15c9   :  { %1867 = vmax.xlane.f32.xlu0 %v1866_v55 }
0x15d8   :  { %1887 = vrot.lane.b32.xlu1 %v4133_v41, %s3688_s24 }
0x15dc   :  { %1985 = vrot.lane.b32.xlu1 %v4133_v41, %s3689_s2 }
0x15e0   :  { %2035 = vrot.lane.b32.xlu1 %v4135_v46, %s3689_s2  ;;  %s4490_s2 = smov 16  }
0x15e4   :  { %1983 = vrot.lane.b32.xlu1 %v4133_v41, %s4484_s27 }
0x1654   :  { %v1865_v57 = vpop.xlane.xlu1 %1864 }
0x1655   :  { %v1869_v58 = vsub.f32 %v1861_v50, %v1865_v57 }
0x1656   :  { %v1868_v59 = vpop.xlane.xlu0 %1867 }
0x1657   :  { %v1871_v61 = vmul.f32 1.442695, %v1869_v58  ;;  %v1870_v62 = vsub.f32 %v1862_v54, %v1868_v59 }
0x1658   :  { %v1888_v63 = vpop.permute.xlu1 %1887 }
0x1659   :  { %3596 = vpow2.f32 %v1871_v61  ;;  %v1873_v0 = vmul.f32 1.442695, %v1870_v62  ;;  %v1893_v1 = vsel %vm338_vm3, %v1888_v63, 0 }
0x165a   :  { %3364 = vmatpush3.bf16.msra.mxu0 %v1893_v1 }
0x165b   :  { %3598 = vpow2.f32 %v1873_v0  ;;  %3375 = vmatprep.subr.bf16.mxu0 %v3682_v15 }
0x165c   :  { %v1986_v5 = vpop.permute.xlu1 %1985 }
0x165d   :  { %v1991_v9 = vsel %vm197_vm2, %v1986_v5, 0 }
0x1660   :  { %v2036_v11 = vpop.permute.xlu1 %2035 }
0x1661   :  { %v2041_v39 = vsel %vm197_vm2, %v2036_v11, 0 }
0x1663   :  { %v3597_v2 = vpop.eup %3596 }
0x1664   :  { %v1875_v42 = vsel %vm197_vm2, %v3597_v2, 0.0  ;;  %v1984_v13 = vpop.permute.xlu1 %1983 }
0x1665   :  { %v3599_v3 = vpop.eup %3598  ;;  %1876 = vadd.xlane.f32.xlu0 %v1875_v42 }
0x1666   :  { %v1878_v30 = vsel %vm197_vm2, %v3599_v3, 0.0 }
0x1669   :  { %1879 = vadd.xlane.f32.xlu0 %v1878_v30 }
0x167f   :  { %1935 = vrot.lane.b32.xlu0 %v4135_v46, %s3688_s24  ;;  %s4489_s24 = smov 8  }
0x1683   :  { %2033 = vrot.lane.b32.xlu0 %v4135_v46, %s4484_s27 }
0x16f2   :  { %v1877_v31 = vpop.xlane.xlu0 %1876 }
0x16f3   :  { %3600 = vrcp.f32 %v1877_v31 }
0x16f6   :  { %v1880_v32 = vpop.xlane.xlu0 %1879 }
0x16f7   :  { %3602 = vrcp.f32 %v1880_v32 }
0x16fa   :  { %v1936_v36 = vpop.permute.xlu0 %1935 }
0x16fb   :  { %v1941_v37 = vsel %vm338_vm3, %v1936_v36, 0 }
0x16fc   :  { %3370 = vmatpush3.bf16.msra.mxu1 %v1941_v37 }
0x16fd   :  { %v3601_v4 = vpop.eup %3600  ;;  %3381 = vmatprep.subr.bf16.mxu1 %v3682_v15 }
0x16fe   :  { %v1883_v6 = vmul.f32 %v3601_v4, %v3597_v2  ;;  %v2034_v14 = vpop.permute.xlu0 %2033 }
0x1700   :  { %v1885_v7 = vpack.c.bf16 %v1883_v6, %v1883_v6 }
0x1701   :  { %v3603_v8 = vpop.eup %3602 }
0x1702   :  { %v1884_v10 = vmul.f32 %v3603_v8, %v3599_v3  ;;  %3366 = vmatmul.mubr.msk.bf16.vlgmr.msra.gmra.mrb[56].mxu0 %vm197_vm2, %v1885_v7 }
0x1703   :  { %3376 = vmatpush3.bf16.xpose.msra.mxu0 %v1991_v9  ;;  %3377 = vmatprep.mubr.msk.bf16.mxu0 %vm3683_vm1, %v3682_v15 }
0x1704   :  { %v1886_v12 = vpack.c.bf16 %v1884_v10, %v1884_v10  ;;  %3387 = vmatprep.subr.bf16.mxu0 %v3682_v15 }
0x1706   :  { %3372 = vmatmul.mubr.msk.bf16.vlgmr.msra.gmra.mrb[52].mxu1 %vm197_vm2, %v1886_v12 }
0x1707   :  { %3382 = vmatpush3.bf16.xpose.msra.mxu1 %v2041_v39  ;;  %3383 = vmatprep.mubr.msk.bf16.mxu1 %vm3683_vm1, %v3682_v15 }
0x1708   :  { %3393 = vmatprep.subr.bf16.mxu1 %v3682_v15 }
0x170a   :  { %3378 = vmatmul.mubr.msk.bf16.vlgmr.msra.gmra.mrb[60].mxu0 %vm197_vm2, %v1984_v13 }
0x170b   :  { %3389 = vmatprep.mubr.msk.bf16.mxu0 %vm3683_vm1, %v3682_v15 }
0x170e   :  { %3384 = vmatmul.mubr.msk.bf16.vlgmr.msra.gmra.mrb[56].mxu1 %vm197_vm2, %v2034_v14 }
0x170f   :  { %3395 = vmatprep.mubr.msk.bf16.mxu1 %vm3683_vm1, %v3682_v15 }
0x17d5   :  { %v4233_v16 = vpop.f32.mrb[56].mxu0 }
0x17d6   :  { %v3367_v17 = vpop.f32.mrb[57].mxu0 }
0x17d7   :  { %v1932_v18 = vpop.f32.mrb[58].mxu0 }
0x17d8   :  { %v3368_v19 = vpop.f32.mrb[59].mxu0 }
0x17d9   :  { %v4235_v20 = vpop.f32.mrb[52].mxu1 }
0x17da   :  { %v3501_v21 = vpack.i.bf16 %v4235_v20, %v4233_v16  ;;  %v3373_v22 = vpop.f32.mrb[53].mxu1 }
0x17db   :  { %v1980_v24 = vpop.f32.mrb[54].mxu1 }
0x17dc   :  { %v3374_v25 = vpop.f32.mrb[55].mxu1 }
0x17dd   :  { %v2027_v29 = vpop.f32.mrb[60].mxu0 }
0x17de   :  { %v2083_v33 = vmul.f32 0.35355338, %v2027_v29  ;;  %v3379_v34 = vpop.f32.mrb[61].mxu0 }
0x17df   :  { %v2030_v35 = vpop.f32.mrb[62].mxu0 }
0x17e0   :  { %v3380_v38 = vpop.f32.mrb[63].mxu0  ;;  %v2085_v43 = vadd.f32 %v2083_v33, %v3879_v56 }
0x17e1   :  { %v2077_v45 = vpop.f32.mrb[56].mxu1 }
0x17e2   :  { %v2084_v47 = vmul.f32 0.35355338, %v2077_v45  ;;  %v3385_v48 = vpop.f32.mrb[57].mxu1  ;;  %v2087_v49 = vsel %vm197_vm2, %v2085_v43, -inf }
0x17e3   :  { %v2080_v40 = vpop.f32.mrb[58].mxu1  ;;  %2088 = vmax.xlane.f32.xlu1 %v2087_v49 }
0x17e4   :  { %v3386_v44 = vpop.f32.mrb[59].mxu1  ;;  %v2086_v50 = vadd.f32 %v2084_v47, %v3881_v60 }
0x17e6   :  { %v2090_v51 = vsel %vm197_vm2, %v2086_v50, -inf }
0x17e7   :  { %2091 = vmax.xlane.f32.xlu0 %v2090_v51 }
0x17f4   :  { %2111 = vrot.lane.b32.xlu1 %v4133_v41, %s4485_s3 }
0x17f8   :  { %2209 = vrot.lane.b32.xlu1 %v4133_v41, %s4486_s22 }
0x17fc   :  { %2259 = vrot.lane.b32.xlu1 %v4135_v46, %s4486_s22 }
0x1800   :  { %2207 = vrot.lane.b32.xlu1 %v4133_v41, %s4487_s23 }
0x1870   :  { %v2089_v52 = vpop.xlane.xlu1 %2088 }
0x1871   :  { %v2093_v53 = vsub.f32 %v2085_v43, %v2089_v52 }
0x1873   :  { %v2095_v54 = vmul.f32 1.442695, %v2093_v53 }
0x1874   :  { %v2092_v55 = vpop.xlane.xlu0 %2091  ;;  %v2112_v57 = vpop.permute.xlu1 %2111 }
0x1875   :  { %3604 = vpow2.f32 %v2095_v54  ;;  %v2094_v58 = vsub.f32 %v2086_v50, %v2092_v55  ;;  %v2117_v59 = vsel %vm338_vm3, %v2112_v57, 0 }
0x1876   :  { %3388 = vmatpush3.bf16.msra.mxu0 %v2117_v59 }
0x1877   :  { %v2097_v61 = vmul.f32 1.442695, %v2094_v58  ;;  %3399 = vmatprep.subr.bf16.mxu0 %v3682_v15 }
0x1878   :  { %v2210_v32 = vpop.permute.xlu1 %2209 }
0x1879   :  { %3606 = vpow2.f32 %v2097_v61  ;;  %v2215_v5 = vsel %vm197_vm2, %v2210_v32, 0 }
0x187c   :  { %v2260_v7 = vpop.permute.xlu1 %2259 }
0x187d   :  { %v2265_v9 = vsel %vm197_vm2, %v2260_v7, 0 }
0x187f   :  { %v3605_v62 = vpop.eup %3604 }
0x1880   :  { %v2099_v63 = vsel %vm197_vm2, %v3605_v62, 0.0  ;;  %v2208_v10 = vpop.permute.xlu1 %2207 }
0x1881   :  { %2100 = vadd.xlane.f32.xlu0 %v2099_v63 }
0x1883   :  { %v3607_v0 = vpop.eup %3606 }
0x1884   :  { %v2102_v1 = vsel %vm197_vm2, %v3607_v0, 0.0 }
0x1885   :  { %2103 = vadd.xlane.f32.xlu0 %v2102_v1 }
0x189b   :  { %2159 = vrot.lane.b32.xlu0 %v4135_v46, %s4485_s3 }
0x189f   :  { %2257 = vrot.lane.b32.xlu0 %v4135_v46, %s4487_s23 }
0x190e   :  { %v2101_v2 = vpop.xlane.xlu0 %2100 }
0x190f   :  { %3608 = vrcp.f32 %v2101_v2 }
0x1912   :  { %v2104_v42 = vpop.xlane.xlu0 %2103 }
0x1913   :  { %3610 = vrcp.f32 %v2104_v42 }
0x1916   :  { %v2160_v3 = vpop.permute.xlu0 %2159 }
0x1917   :  { %v2165_v30 = vsel %vm338_vm3, %v2160_v3, 0  ;;  %v3528_v3 = vld [vmem:[%s4438_s6 + $0x10] sm:$0xff]  }
0x1918   :  { %3394 = vmatpush3.bf16.msra.mxu1 %v2165_v30  ;;  %v3529_v30 = vld [vmem:[%s4438_s6 + $0x18] sm:$0xff]  }
0x1919   :  { %v3609_v31 = vpop.eup %3608  ;;  %3405 = vmatprep.subr.bf16.mxu1 %v3682_v15 }
0x191a   :  { %v2107_v36 = vmul.f32 %v3609_v31, %v3605_v62  ;;  %v2258_v11 = vpop.permute.xlu0 %2257 }
0x191c   :  { %v2109_v37 = vpack.c.bf16 %v2107_v36, %v2107_v36 }
0x191d   :  { %v3611_v4 = vpop.eup %3610 }
0x191e   :  { %v2108_v6 = vmul.f32 %v3611_v4, %v3607_v0  ;;  %3390 = vmatmul.mubr.msk.bf16.vlgmr.msra.gmra.mrb[64].mxu0 %vm197_vm2, %v2109_v37 }
0x191f   :  { %3400 = vmatpush3.bf16.xpose.msra.mxu0 %v2215_v5  ;;  %3401 = vmatprep.mubr.msk.bf16.mxu0 %vm3683_vm1, %v3682_v15 }
0x1920   :  { %v2110_v8 = vpack.c.bf16 %v2108_v6, %v2108_v6  ;;  %3411 = vmatprep.subr.bf16.mxu0 %v3682_v15 }
0x1922   :  { %3396 = vmatmul.mubr.msk.bf16.vlgmr.msra.gmra.mrb[60].mxu1 %vm197_vm2, %v2110_v8 }
0x1923   :  { %3406 = vmatpush3.bf16.xpose.msra.mxu1 %v2265_v9  ;;  %3407 = vmatprep.mubr.msk.bf16.mxu1 %vm3683_vm1, %v3682_v15 }
0x1924   :  { %3417 = vmatprep.subr.bf16.mxu1 %v3682_v15 }
0x1926   :  { %3402 = vmatmul.mubr.msk.bf16.vlgmr.msra.gmra.mrb[68].mxu0 %vm197_vm2, %v2208_v10 }
0x1927   :  { %3413 = vmatprep.mubr.msk.bf16.mxu0 %vm3683_vm1, %v3682_v15 }
0x192a   :  { %3408 = vmatmul.mubr.msk.bf16.vlgmr.msra.gmra.mrb[64].mxu1 %vm197_vm2, %v2258_v11 }
0x192b   :  { %3419 = vmatprep.mubr.msk.bf16.mxu1 %vm3683_vm1, %v3682_v15 }
0x19f1   :  { %v2153_v12 = vpop.f32.mrb[64].mxu0 }
0x19f2   :  { %v3391_v39 = vpop.f32.mrb[65].mxu0 }
0x19f3   :  { %v2156_v13 = vpop.f32.mrb[66].mxu0 }
0x19f4   :  { %v3392_v14 = vpop.f32.mrb[67].mxu0 }
0x19f5   :  { %v2201_v17 = vpop.f32.mrb[60].mxu1 }
0x19f6   :  { %v3506_v18 = vpack.i.bf16 %v2201_v17, %v2153_v12  ;;  %v3397_v19 = vpop.f32.mrb[61].mxu1 }
0x19f7   :  { %v2204_v22 = vpop.f32.mrb[62].mxu1 }
0x19f8   :  { %v3398_v24 = vpop.f32.mrb[63].mxu1 }
0x19f9   :  { %v2251_v25 = vpop.f32.mrb[68].mxu0 }
0x19fa   :  { %v2307_v29 = vmul.f32 0.35355338, %v2251_v25  ;;  %v3403_v33 = vpop.f32.mrb[69].mxu0 }
0x19fb   :  { %v2254_v34 = vpop.f32.mrb[70].mxu0 }
0x19fc   :  { %v3404_v35 = vpop.f32.mrb[71].mxu0  ;;  %v2309_v38 = vadd.f32 %v2307_v29, %v3879_v56 }
0x19fd   :  { %v2301_v43 = vpop.f32.mrb[64].mxu1 }
0x19fe   :  { %v2308_v45 = vmul.f32 0.35355338, %v2301_v43  ;;  %v3409_v47 = vpop.f32.mrb[65].mxu1  ;;  %v2311_v48 = vsel %vm197_vm2, %v2309_v38, -inf }
0x19ff   :  { %v2304_v49 = vpop.f32.mrb[66].mxu1  ;;  %2312 = vmax.xlane.f32.xlu1 %v2311_v48 }
0x1a00   :  { %v3410_v40 = vpop.f32.mrb[67].mxu1  ;;  %v2310_v44 = vadd.f32 %v2308_v45, %v3881_v60 }
0x1a02   :  { %v2314_v50 = vsel %vm197_vm2, %v2310_v44, -inf }
0x1a03   :  { %2315 = vmax.xlane.f32.xlu0 %v2314_v50 }
0x1a10   :  { %2335 = vrot.lane.b32.xlu1 %v4133_v41, %s4488_s1 }
0x1a14   :  { %3502 = vrot.lane.b32.xlu1 %v3501_v21, %s4489_s24 }
0x1a18   :  { %3507 = vrot.lane.b32.xlu1 %v3506_v18, %s4490_s2  ;;  %s3698_s2 = smov [#allocation2]  }
0x1a8c   :  { %v2313_v56 = vpop.xlane.xlu1 %2312 }
0x1a8d   :  { %v2317_v51 = vsub.f32 %v2309_v38, %v2313_v56 }
0x1a8f   :  { %v2319_v52 = vmul.f32 1.442695, %v2317_v51 }
0x1a90   :  { %v2316_v53 = vpop.xlane.xlu0 %2315  ;;  %v2336_v54 = vpop.permute.xlu1 %2335 }
0x1a91   :  { %3612 = vpow2.f32 %v2319_v52  ;;  %v2318_v60 = vsub.f32 %v2310_v44, %v2316_v53  ;;  %v2341_v55 = vsel %vm338_vm3, %v2336_v54, 0 }
0x1a92   :  { %3412 = vmatpush3.bf16.msra.mxu0 %v2341_v55 }
0x1a93   :  { %v2321_v57 = vmul.f32 1.442695, %v2318_v60  ;;  %3423 = vmatprep.subr.bf16.mxu0 %v3682_v15 }
0x1a94   :  { %v3503_v9 = vpop.permute.xlu1 %3502 }
0x1a95   :  { %3614 = vpow2.f32 %v2321_v57  ;;  %v3505_v11 = vunpack.i.h.bf16 %v3503_v9  ;;  %v3504_v12 = vunpack.i.l.bf16 %v3503_v9 }
0x1a97   :  { %v2456_v17 = vsel %vm197_vm2, %v4193_v28, %v3505_v11  ;;  %v2455_v18 = vsel %vm197_vm2, %v4191_v23, %v3504_v12  ;;  %v3045_v23 = vld [vmem:[%s4439_s7 + $0x1] ss:$0 sm:$0xff] }
0x1a98   :  { %v3508_v10 = vpop.permute.xlu1 %3507 }
0x1a99   :  { %v3510_v39 = vunpack.i.h.bf16 %v3508_v10  ;;  %v3509_v13 = vunpack.i.l.bf16 %v3508_v10 }
0x1a9b   :  { %v3613_v41 = vpop.eup %3612  ;;  %v2457_v24 = vsel %vm1128_vm4, %v2455_v18, %v3509_v13  ;;  %v2458_v25 = vsel %vm1128_vm4, %v2456_v17, %v3510_v39 }
0x1a9c   :  { %v2323_v16 = vsel %vm197_vm2, %v3613_v41, 0.0 }
0x1a9d   :  { %2324 = vadd.xlane.f32.xlu0 %v2323_v16 }
0x1a9f   :  { %v3615_v20 = vpop.eup %3614 }
0x1aa0   :  { %v2326_v21 = vsel %vm197_vm2, %v3615_v20, 0.0 }
0x1aa1   :  { %2327 = vadd.xlane.f32.xlu0 %v2326_v21 }
0x1ab7   :  { %2383 = vrot.lane.b32.xlu0 %v4135_v46, %s4488_s1 }
0x1b2a   :  { %v2325_v58 = vpop.xlane.xlu0 %2324 }
0x1b2b   :  { %3616 = vrcp.f32 %v2325_v58 }
0x1b2e   :  { %v2328_v59 = vpop.xlane.xlu0 %2327 }
0x1b2f   :  { %3618 = vrcp.f32 %v2328_v59 }
0x1b32   :  { %v2384_v61 = vpop.permute.xlu0 %2383 }
0x1b33   :  { %v2389_v62 = vsel %vm338_vm3, %v2384_v61, 0 }
0x1b34   :  { %3418 = vmatpush3.bf16.msra.mxu1 %v2389_v62 }
0x1b35   :  { %v3617_v63 = vpop.eup %3616  ;;  %3431 = vmatprep.subr.bf16.mxu1 %v3682_v15 }
0x1b36   :  { %v2331_v0 = vmul.f32 %v3617_v63, %v3613_v41  ;;  %v3531_v41 = vld [vmem:[%s4442_s10 + $0x18] sm:$0xff]  }
0x1b38   :  { %v2333_v1 = vpack.c.bf16 %v2331_v0, %v2331_v0  ;;  %v3051_v0 = vld [vmem:[%s4440_s8 + $0x1] ss:$0 sm:$0xff]  ;;  %s2950_s8 = sshll.u32 %s3698_s2, 4  ;;  %s2951_s8 = int_to_ptr.vmem [resolvable:$true] %s2950_s8 }
0x1b39   :  { %v3619_v2 = vpop.eup %3618  ;;  %s3634_s26 = scalar_lea.vmem %s2951_s8, 256  ;;  %p3639_p1 = scmp.lt.s32.totalorder %s2951_s8, %s2951_s8 }
0x1b3a   :  { %v2332_v42 = vmul.f32 %v3619_v2, %v3615_v20  ;;  %3414 = vmatmul.mubr.msk.bf16.vlgmr.msra.gmra.mrb[72].mxu0 %vm197_vm2, %v2333_v1  ;;  %p3635_p0 = scmp.ne.s32.totalorder %s2951_s8, %s3634_s26  ;;  %p3640_p2 = scmp.lt.s32.totalorder %s3634_s26, %s3634_s26 }
0x1b3b   :  { %3427 = vmatprep.mubr.msk.bf16.mxu0 %vm3683_vm1, %v3682_v15  ;;  %3424 = vmatpush3.bf16.msra.mxu0 %v3528_v3 }
0x1b3c   :  { %v2334_v46 = vpack.c.bf16 %v2332_v42, %v2332_v42  ;;  %3425 = vmatprep.subr.bf16.mxu0 %v3682_v15  ;;  %p3641_p3 = por %p3640_p2, %p3639_p1 }
0x1b3e   :  { %3420 = vmatmul.mubr.msk.bf16.vlgmr.msra.gmra.mrb[68].mxu1 %vm197_vm2, %v2334_v46  ;;  %v3052_v46 = vld [vmem:[%s4441_s9 + $0x1] ss:$0 sm:$0xff]  ;;  %p3642_p4 = pnand %p3641_p3, %p3635_p0 }
0x1b3f   :  { %3435 = vmatprep.mubr.msk.bf16.mxu1 %vm3683_vm1, %v3682_v15  ;;  %3426 = vmatpush3.bf16.msra.mxu0 %v3529_v30 }
0x1b40   :  { %3439 = vmatprep.subr.bf16.mxu0 %v3682_v15 }
0x1c0d   :  { %v2377_v31 = vpop.f32.mrb[72].mxu0 }
0x1c0e   :  { %v3415_v32 = vpop.f32.mrb[73].mxu0 }
0x1c0f   :  { %v2380_v36 = vpop.f32.mrb[74].mxu0 }
0x1c10   :  { %v3416_v37 = vpop.f32.mrb[75].mxu0  ;;  %v3532_v36 = vld [vmem:[%s4444_s12 + $0x20] sm:$0xff]  }
0x1c11   :  { %v2425_v4 = vpop.f32.mrb[68].mxu1  ;;  %v3533_v37 = vld [vmem:[%s4444_s12 + $0x28] sm:$0xff]  }
0x1c12   :  { %v3511_v5 = vpack.i.bf16 %v2425_v4, %v2377_v31  ;;  %v3421_v6 = vpop.f32.mrb[69].mxu1  ;;  %v3534_v4 = vld [vmem:[%s4444_s12 + $0x30] sm:$0xff]  }
0x1c13   :  { %v2428_v7 = vpop.f32.mrb[70].mxu1  ;;  %v3058_v6 = vld [vmem:[%s4443_s11 + $0x1] ss:$0 sm:$0xff] }
0x1c14   :  { %v3422_v8 = vpop.f32.mrb[71].mxu1  ;;  %3512 = vrot.lane.b32.xlu1 %v3511_v5, %s4491_s0  ;;  %v3535_v5 = vld [vmem:[%s4444_s12 + $0x38] sm:$0xff]  }
0x1c86   :  { %v3513_v14 = vpop.permute.xlu1 %3512 }
0x1c87   :  { %v3515_v19 = vunpack.i.h.bf16 %v3513_v14  ;;  %v3514_v22 = vunpack.i.l.bf16 %v3513_v14 }
0x1c89   :  { %v2460_v29 = vsel %vm1131_vm5, %v2458_v25, %v3515_v19  ;;  %v2459_v33 = vsel %vm1131_vm5, %v2457_v24, %v3514_v22 }
0x1c8a   :  { %v2466_v34 = vpack.c.bf16 %v2460_v29, %v2459_v33 }
0x1c8c   :  { %3428 = vmatmul.mubr.msk.bf16.vlgmr.msra.gmra.mrb[76].mxu0 %vm74_vm0, %v2466_v34 }
0x1c8d   :  { %3447 = vmatprep.mubr.msk.bf16.mxu0 %vm3683_vm1, %v3682_v15  ;;  %3440 = vmatpush3.bf16.msra.mxu0 %v3532_v36  ;;  %v3080_v36 = vld [vmem:[%s4447_s15 + $0x1] ss:$0 sm:$0xff] }
0x1c8e   :  { %3441 = vmatprep.subr.bf16.mxu0 %v3682_v15 }
0x1c91   :  { %3442 = vmatpush3.bf16.msra.mxu0 %v3533_v37 }
0x1c92   :  { %3443 = vmatprep.subr.bf16.mxu0 %v3682_v15 }
0x1c95   :  { %3444 = vmatpush3.bf16.msra.mxu0 %v3534_v4 }
0x1c96   :  { %3445 = vmatprep.subr.bf16.mxu0 %v3682_v15 }
0x1c99   :  { %3446 = vmatpush3.bf16.msra.mxu0 %v3535_v5 }
0x1d5f   :  { %v2524_v28 = vpop.f32.mrb[76].mxu0 }
0x1d60   :  { %v2525_v35 = vadd.f32 %v3045_v23, %v2524_v28  ;;  %v3429_v38 = vpop.f32.mrb[77].mxu0 }
0x1d61   :  { %v2527_v43 = vpop.f32.mrb[78].mxu0 }
0x1d62   :  { %v2528_v45 = vadd.f32 %v3045_v23, %v2527_v43  ;;  %v3430_v47 = vpop.f32.mrb[79].mxu0  ;;  %v2531_v48 = vadd.f32 %v2525_v35, %v4121_v26 }
0x1d64   :  { %v2537_v49 = vsel %vm74_vm0, %v2531_v48, 0.0  ;;  %v2532_v40 = vadd.f32 %v2528_v45, %v4123_v27  ;;  %v3530_v27 = vld [vmem:[%s4442_s10 + $0x10] sm:$0xff]  }
0x1d65   :  { %2538 = vadd.xlane.f32.xlu0 %v2537_v49  ;;  %3432 = vmatpush3.bf16.msra.mxu1 %v3530_v27 }
0x1d66   :  { %v2540_v44 = vsel %vm74_vm0, %v2532_v40, 0.0  ;;  %3433 = vmatprep.subr.bf16.mxu1 %v3682_v15 }
0x1d67   :  { %2541 = vadd.xlane.f32.xlu1 %v2540_v44 }
0x1d69   :  { %3434 = vmatpush3.bf16.msra.mxu1 %v3531_v41 }
0x1d6a   :  { %3451 = vmatprep.subr.bf16.mxu1 %v3682_v15 }
0x1df2   :  { %v2539_v50 = vpop.xlane.xlu0 %2538 }
0x1df3   :  { %v2543_v56 = vmul.f32 0.03125, %v2539_v50 }
0x1df4   :  { %v2542_v51 = vpop.xlane.xlu1 %2541 }
0x1df5   :  { %v2545_v52 = vsub.f32 %v2531_v48, %v2543_v56  ;;  %v2544_v53 = vmul.f32 0.03125, %v2542_v51  ;;  %v3071_v48 = vld [vmem:[%s4445_s13 + $0x1] ss:$0 sm:$0xff] }
0x1df7   :  { %v2546_v54 = vsub.f32 %v2532_v40, %v2544_v53  ;;  %v2547_v60 = vmul.f32 %v2545_v52, %v2545_v52 }
0x1df9   :  { %v2549_v55 = vsel %vm74_vm0, %v2547_v60, 0.0  ;;  %v2548_v57 = vmul.f32 %v2546_v54, %v2546_v54 }
0x1dfa   :  { %2550 = vadd.xlane.f32.xlu0 %v2549_v55 }
0x1dfb   :  { %v2552_v26 = vsel %vm74_vm0, %v2548_v57, 0.0 }
0x1dfe   :  { %2553 = vadd.xlane.f32.xlu0 %v2552_v26 }
0x1e87   :  { %v2551_v16 = vpop.xlane.xlu0 %2550 }
0x1e88   :  { %v2555_v20 = vmul.f32 0.03125, %v2551_v16 }
0x1e8a   :  { %v2557_v21 = vadd.f32 1e-12, %v2555_v20 }
0x1e8b   :  { %v2554_v58 = vpop.xlane.xlu0 %2553 }
0x1e8c   :  { %3620 = vrsqrt.f32 %v2557_v21  ;;  %v2556_v59 = vmul.f32 0.03125, %v2554_v58 }
0x1e8e   :  { %v2558_v61 = vadd.f32 1e-12, %v2556_v59 }
0x1e90   :  { %3622 = vrsqrt.f32 %v2558_v61  ;;  %v3536_v61 = vld [vmem:[%s4448_s16] sm:$0xff]  }
0x1e96   :  { %v3621_v62 = vpop.eup %3620 }
0x1e97   :  { %v2561_v63 = vmul.f32 %v3621_v62, %v2545_v52  ;;  %v3537_v62 = vld [vmem:[%s4448_s16 + $0x8] sm:$0xff]  }
0x1e99   :  { %v2569_v2 = vmul.f32 %v3051_v0, %v2561_v63 }
0x1e9a   :  { %v3623_v1 = vpop.eup %3622 }
0x1e9b   :  { %v2562_v42 = vmul.f32 %v3623_v1, %v2546_v54  ;;  %v2577_v30 = vadd.f32 %v3052_v46, %v2569_v2 }
0x1e9d   :  { %v2570_v3 = vmul.f32 %v3051_v0, %v2562_v42 }
0x1e9f   :  { %v2578_v31 = vadd.f32 %v3052_v46, %v2570_v3 }
0x1ea1   :  { %v2584_v32 = vpack.c.bf16 %v2578_v31, %v2577_v30 }
0x1ea3   :  { %3436 = vmatmul.mubr.msk.bf16.vlgmr.msra.gmra.mrb[72].mxu1 %vm74_vm0, %v2584_v32 }
0x1ea4   :  { %3455 = vmatprep.mubr.msk.bf16.mxu1 %vm3683_vm1, %v3682_v15  ;;  %3452 = vmatpush3.bf16.msra.mxu1 %v3536_v61 }
0x1ea5   :  { %3453 = vmatprep.subr.bf16.mxu1 %v3682_v15 }
0x1ea8   :  { %3454 = vmatpush3.bf16.msra.mxu1 %v3537_v62 }
0x1ea9   :  { %3459 = vmatprep.subr.bf16.mxu1 %v3682_v15 }
0x1f76   :  { %v2642_v7 = vpop.f32.mrb[72].mxu1 }
0x1f77   :  { %v2643_v8 = vadd.f32 %v3058_v6, %v2642_v7  ;;  %v3437_v9 = vpop.f32.mrb[73].mxu1 }
0x1f78   :  { %v2645_v10 = vpop.f32.mrb[74].mxu1 }
0x1f79   :  { %v2649_v11 = vmul.f32 %v2643_v8, %v2643_v8  ;;  %v2646_v12 = vadd.f32 %v3058_v6, %v2645_v10  ;;  %v3438_v39 = vpop.f32.mrb[75].mxu1 }
0x1f7a   :  { %v3081_v39 = vld [vmem:[%s4449_s17] ss:$0 sm:$0xff] }
0x1f7b   :  { %v2651_v13 = vmul.f32 %v2649_v11, %v2643_v8  ;;  %v2650_v14 = vmul.f32 %v2646_v12, %v2646_v12  ;;  %v3538_v11 = vld [vmem:[%s4450_s18] sm:$0xff]  }
0x1f7d   :  { %v2653_v17 = vmul.f32 0.044715, %v2651_v13  ;;  %v2652_v18 = vmul.f32 %v2650_v14, %v2646_v12 }
0x1f7f   :  { %v2655_v19 = vadd.f32 %v2653_v17, %v2643_v8  ;;  %v2654_v22 = vmul.f32 0.044715, %v2652_v18 }
0x1f81   :  { %v2657_v24 = vmul.f32 0.7978846, %v2655_v19  ;;  %v2656_v25 = vadd.f32 %v2654_v22, %v2646_v12 }
0x1f83   :  { %3624 = vtanh.f32 %v2657_v24  ;;  %v2658_v29 = vmul.f32 0.7978846, %v2656_v25 }
0x1f85   :  { %3626 = vtanh.f32 %v2658_v29 }
0x1f8d   :  { %v3625_v33 = vpop.eup %3624 }
0x1f8e   :  { %v2661_v34 = vadd.f32 1.0, %v3625_v33 }
0x1f8f   :  { %v3627_v23 = vpop.eup %3626 }
0x1f90   :  { %v2663_v28 = vmul.f32 0.5, %v2661_v34  ;;  %v2662_v35 = vadd.f32 1.0, %v3627_v23 }
0x1f92   :  { %v2664_v38 = vmul.f32 0.5, %v2662_v35  ;;  %v2665_v43 = vmul.f32 %v2663_v28, %v2643_v8 }
0x1f94   :  { %v2666_v45 = vmul.f32 %v2664_v38, %v2646_v12  ;;  %v3539_v12 = vld [vmem:[%s4450_s18 + $0x8] sm:$0xff]  }
0x1f96   :  { %v2676_v47 = vpack.c.bf16 %v2666_v45, %v2665_v43 }
0x1f98   :  { %3448 = vmatmul.mubr.msk.bf16.vlgmr.msra.gmra.mrb[80].mxu0 %vm1374_vm6, %v2676_v47 }
0x206b   :  { %v2746_v49 = vpop.f32.mrb[80].mxu0 }
0x206c   :  { %v2747_v40 = vadd.f32 %v3071_v48, %v2746_v49  ;;  %v3449_v44 = vpop.f32.mrb[81].mxu0 }
0x206d   :  { %v2749_v50 = vpop.f32.mrb[82].mxu0 }
0x206e   :  { %v2753_v56 = vadd.f32 %v2747_v40, %v2577_v30  ;;  %v2750_v51 = vadd.f32 %v3071_v48, %v2749_v50  ;;  %v3450_v52 = vpop.f32.mrb[83].mxu0  ;;  %v3079_v30 = vld [vmem:[%s4446_s14 + $0x1] ss:$0 sm:$0xff] }
0x2070   :  { %v2754_v53 = vadd.f32 %v2750_v51, %v2578_v31  ;;  %v2759_v54 = vsel %vm74_vm0, %v2753_v56, 0.0 }
0x2071   :  { %2760 = vadd.xlane.f32.xlu1 %v2759_v54 }
0x2072   :  { %v2762_v60 = vsel %vm74_vm0, %v2754_v53, 0.0 }
0x2073   :  { %2763 = vadd.xlane.f32.xlu0 %v2762_v60 }
0x20fe   :  { %v2761_v55 = vpop.xlane.xlu1 %2760 }
0x20ff   :  { %v2765_v57 = vmul.f32 0.03125, %v2761_v55 }
0x2100   :  { %v2764_v26 = vpop.xlane.xlu0 %2763 }
0x2101   :  { %v2767_v27 = vsub.f32 %v2753_v56, %v2765_v57  ;;  %v2766_v41 = vmul.f32 0.03125, %v2764_v26 }
0x2103   :  { %v2768_v16 = vsub.f32 %v2754_v53, %v2766_v41  ;;  %v2769_v20 = vmul.f32 %v2767_v27, %v2767_v27 }
0x2105   :  { %v2771_v21 = vsel %vm74_vm0, %v2769_v20, 0.0  ;;  %v2770_v58 = vmul.f32 %v2768_v16, %v2768_v16 }
0x2106   :  { %2772 = vadd.xlane.f32.xlu1 %v2771_v21 }
0x2107   :  { %v2774_v59 = vsel %vm74_vm0, %v2770_v58, 0.0 }
0x2108   :  { %2775 = vadd.xlane.f32.xlu0 %v2774_v59 }
0x2193   :  { %v2773_v63 = vpop.xlane.xlu1 %2772 }
0x2194   :  { %v2777_v0 = vmul.f32 0.03125, %v2773_v63 }
0x2195   :  { %v2776_v1 = vpop.xlane.xlu0 %2775 }
0x2196   :  { %v2779_v2 = vadd.f32 1e-12, %v2777_v0  ;;  %v2778_v42 = vmul.f32 0.03125, %v2776_v1 }
0x2198   :  { %3628 = vrsqrt.f32 %v2779_v2  ;;  %v2780_v46 = vadd.f32 1e-12, %v2778_v42 }
0x219a   :  { %3630 = vrsqrt.f32 %v2780_v46 }
0x21a2   :  { %v3629_v3 = vpop.eup %3628 }
0x21a3   :  { %v2783_v31 = vmul.f32 %v3629_v3, %v2767_v27 }
0x21a4   :  { %v3631_v32 = vpop.eup %3630 }
0x21a5   :  { %v2791_v37 = vmul.f32 %v3079_v30, %v2783_v31  ;;  %v2784_v4 = vmul.f32 %v3631_v32, %v2768_v16 }
0x21a7   :  { %v2799_v5 = vadd.f32 %v3080_v36, %v2791_v37  ;;  %v2792_v6 = vmul.f32 %v3079_v30, %v2784_v4 }
0x21a9   :  { %2801 = vst.msk [vmem:[#allocation2] sm:$0xff] %vm74_vm0, %v2799_v5  ;;  %v2800_v7 = vadd.f32 %v3080_v36, %v2792_v6 }
0x21ab   :  { %2802 = vst.msk [vmem:[#allocation2 + $0x8] sm:$0xff] %vm74_vm0, %v2800_v7  ;;  %v2804_v8 = vrot.slane %v2800_v7, 7 }
0x21ad   :  { %v2807_v9 = vsel %vm2806_vm7, %v2799_v5, %v2804_v8 }
0x21ae   :  { %v2812_v10 = vpack.c.bf16 %v2807_v9, %v2807_v9 }
0x21b0   :  { %3456 = vmatmul.mubr.msk.bf16.vlgmr.msra.gmra.mrb[76].mxu1 %vm74_vm0, %v2812_v10 }
0x21b1   :  { %3463 = vmatprep.mubr.msk.bf16.mxu1 %vm3683_vm1, %v3682_v15  ;;  %3460 = vmatpush3.bf16.msra.mxu1 %v3538_v11 }
0x21b2   :  { %3461 = vmatprep.subr.bf16.mxu1 %v3682_v15 }
0x21b5   :  { %3462 = vmatpush3.bf16.msra.mxu1 %v3539_v12 }
0x2283   :  { %v2869_v13 = vpop.f32.mrb[76].mxu1 }
0x2284   :  { %v2870_v14 = vadd.f32 %v3081_v39, %v2869_v13  ;;  %v3457_v17 = vpop.f32.mrb[77].mxu1 }
0x2285   :  { %v2872_v18 = vpop.f32.mrb[78].mxu1 }
0x2286   :  { %3632 = vtanh.f32 %v2870_v14  ;;  %v3458_v19 = vpop.f32.mrb[79].mxu1 }
0x2290   :  { %v3633_v22 = vpop.eup %3632 }
0x2291   :  { %v2880_v24 = vpack.c.bf16 %v3633_v22, %v3633_v22 }
0x2293   :  { %3464 = vmatmul.mubr.msk.bf16.vlgmr.msra.gmra.mrb[80].mxu1 %vm74_vm0, %v2880_v24 }
0x2294   :  { %3645 = shalt.err (!%p3642_p4)
}
0x2295   :  { %s3646_s9 = scalar_lea.hbm %s4452_s20, 256 }
0x2296   :  { %p3647_p5 = scmp.ne.s32.totalorder %s4452_s20, %s3646_s9  ;;  %p3650_p6 = scmp.lt.u32.totalorder %s3646_s9, %s4452_s20 }
0x2298   :  { %p3652_p7 = pnand %p3650_p6, %p3647_p5 }
0x229a   :  { %3655 = shalt.err (!%p3652_p7)
}
0x229b   :  { %s3699_s6 = smov 128   ;;  %v3085_v15 = vld [vmem:[%s4451_s19] ss:$0 sm:$0xff]  ;;  %s3700_s7 = smov [#allocation4]   ;;  %vm2943_vm8 = vcmask 17408  }
0x229c   :  { %2956 = dma.vmem_to_hbm [thread:$0]  %s2951_s8, 256, %s4452_s20, [#allocation3], %s3699_s6, %s3699_s6, %s4489_s24  }
0x229d   :  { %s2963_s30 = sshll.u32 %s3700_s7, 4  ;;  %s2964_s30 = int_to_ptr.vmem [resolvable:$true] %s2963_s30 }
0x229e   :  { %s3656_s4 = scalar_lea.vmem %s2964_s30, 32  ;;  %p3661_p9 = scmp.lt.s32.totalorder %s2964_s30, %s2964_s30 }
0x229f   :  { %p3657_p8 = scmp.ne.s32.totalorder %s2964_s30, %s3656_s4  ;;  %p3662_p10 = scmp.lt.s32.totalorder %s3656_s4, %s3656_s4 }
0x22a1   :  { %p3663_p11 = por %p3662_p10, %p3661_p9 }
0x22a3   :  { %p3664_p12 = pnand %p3663_p11, %p3657_p8 }
0x2366   :  { %v2937_v25 = vpop.f32.mrb[80].mxu1 }
0x2367   :  { %v2938_v29 = vadd.f32 %v3085_v15, %v2937_v25  ;;  %v3465_v33 = vpop.f32.mrb[81].mxu1 }
0x2368   :  { %v2940_v34 = vpop.f32.mrb[82].mxu1 }
0x2369   :  { %v3466_v23 = vpop.f32.mrb[83].mxu1  ;;  %2944 = vst.msk [vmem:[#allocation4] sm:$0x3] %vm2943_vm8, %v2938_v29 }
0x236a   :  { %3667 = shalt.err (!%p3664_p12)
}
0x236b   :  { %s3668_s19 = scalar_lea.hbm %s4453_s21, 32 }
0x236c   :  { %p3669_p13 = scmp.ne.s32.totalorder %s4453_s21, %s3668_s19  ;;  %p3672_p0 = scmp.lt.u32.totalorder %s3668_s19, %s4453_s21 }
0x236e   :  { %p3674_p1 = pnand %p3672_p0, %p3669_p13 }
0x2370   :  { %3677 = shalt.err (!%p3674_p1)
}
0x2371   :  { %2966 = dma.vmem_to_hbm [thread:$0]  %s2964_s30, 32, %s4453_s21, [#allocation5]  }
0x2372   :  { %3678 = dma.done.wait [#allocation3], 256  }
0x2373   :  { %3679 = vsyncadd [#allocation3], 4294967040 }
0x2374   :  { %3680 = dma.done.wait [#allocation5], 32  }
0x2375   :  { %3681 = vsyncadd [#allocation5], 4294967264 }
0x2376   :  { %2973 = vsyncpa [#allocation3], 1 }
0x2377   :  { %2974 = vsyncpa [#allocation5], 1 }

</bundles_post_ra>
